<compile_context>
chip_gen: v6e
topology: v6e:2x2x1
jax: 0.10.0
libtpu: 0.0.40
codegen_flags: <defaults>
</compile_context>

<pallas_src>
import jax
import jax.numpy as jnp
from jax.experimental import pallas as pl
from jax.experimental.pallas import tpu as pltpu


# --------------------------- kernels ---------------------------------------


def _gcn_kernel_resident(a_ref, x_ref, w_ref, b_ref, o_ref):
    # 1-hop aggregation: (tile_m, N) @ (N, F_in) on the MXU, f32 accumulation.
    agg = jnp.dot(a_ref[...], x_ref[...], preferred_element_type=jnp.float32)
    # Linear transform in bf16 (fast MXU path), f32 accumulate, then bias.
    out = jnp.dot(agg.astype(jnp.bfloat16), w_ref[...],
                  preferred_element_type=jnp.float32) + b_ref[...]
    # activation is None in the reference module's default config -> identity.
    o_ref[...] = out.astype(o_ref.dtype)


def _gcn_kernel_ktiled(a_ref, x_ref, w_ref, b_ref, o_ref, acc_ref):
    k = pl.program_id(1)

    # Partial 1-hop aggregation over this K-slice on the MXU.
    part = jnp.dot(a_ref[...], x_ref[...], preferred_element_type=jnp.float32)

    @pl.when(k == 0)
    def _init():
        # Direct write (no zero-init store + full-tile add).
        acc_ref[...] = part

    @pl.when(k > 0)
    def _accum():
        acc_ref[...] += part

    @pl.when(k == pl.num_programs(1) - 1)
    def _finalize():
        out = jnp.dot(acc_ref[...].astype(jnp.bfloat16), w_ref[...],
                      preferred_element_type=jnp.float32) + b_ref[...]
        o_ref[...] = out.astype(o_ref.dtype)


# --------------------------- wrapper ----------------------------------------


def _vmem_capacity_bytes():
    try:
        return int(pltpu.get_tpu_info().vmem_capacity_bytes)
    except Exception:
        return 64 * 1024 * 1024  # conservative (v7x)


def _pick_row_tile(n):
    # Prefer >= 4 row tiles (keeps both v7x TensorCores busy), otherwise the
    # largest multiple-of-8 divisor of n.
    cap = max(8, n // 4)
    for t in (1024, 512, 256, 128, 64, 32, 16, 8):
        if t <= cap and n % t == 0:
            return t
    return n


def _pick_k_tile(n):
    for t in (2048, 1024, 512, 256, 128):
        if n % t == 0:
            return t
    return n  # full dim is always layout-legal


def _resident_vmem_bytes(tile_m, n, f_in, f_out):
    a = 2 * tile_m * n * 2          # A_hat stripe, bf16, double-buffered
    x = 2 * n * f_in * 2            # X resident (pipeline still double-buffers)
    w = 2 * f_in * f_out * 2        # weight, bf16
    b = 2 * 1 * f_out * 4
    o = 2 * tile_m * f_out * 4
    tmp = tile_m * max(f_in, f_out) * 4
    return a + x + w + b + o + tmp


def _ktiled_vmem_bytes(tile_m, tile_k, f_in, f_out):
    a = 2 * tile_m * tile_k * 2
    x = 2 * tile_k * f_in * 2
    w = 2 * f_in * f_out * 2
    b = 2 * 1 * f_out * 4
    o = 2 * tile_m * f_out * 4
    acc = tile_m * f_in * 4
    return a + x + w + b + o + acc


def dist_gcn_conv(a_hat, feats, weight, bias, *, tile_m=None, tile_k=None,
                  out_dtype=jnp.float32, force_ktiled=False):
    """Fused GCN convolution forward: (A_hat @ X) @ W + b."""
    N, F_in = feats.shape
    assert a_hat.shape == (N, N), "A_hat must be (N, N)"
    assert weight.shape[0] == F_in, "weight must be (F_in, F_out)"
    F_out = weight.shape[1]
    bias = jnp.asarray(bias, jnp.float32)
    assert bias.size == F_out, "bias must have F_out elements"
    bias2d = bias.reshape(1, F_out)

    # Streamed operands in bf16 (HBM-bound on the adjacency stream); weight in
    # bf16 so the finalize matmul takes the fast MXU path (f32 accumulation).
    a_bf = a_hat.astype(jnp.bfloat16)
    x_bf = feats.astype(jnp.bfloat16)
    w_bf = weight.astype(jnp.bfloat16)

    vmem_cap = _vmem_capacity_bytes()
    vmem_limit = min(vmem_cap - (8 << 20), int(0.85 * vmem_cap))
    budget = int(0.8 * vmem_limit)

    if tile_m is None:
        tile_m = _pick_row_tile(N)
    assert N % tile_m == 0 and tile_m % 8 == 0

    flops = 2 * N * N * F_in + 2 * N * F_in * F_out
    out_bytes = N * F_out * jnp.dtype(out_dtype).itemsize
    param_bytes = w_bf.size * 2 + bias2d.size * 4

    use_resident = (not force_ktiled) and (
        _resident_vmem_bytes(tile_m, N, F_in, F_out) <= budget)

    if use_resident:
        grid = (N // tile_m,)
        bytes_accessed = a_bf.size * 2 + x_bf.size * 2 + param_bytes + out_bytes
        return pl.pallas_call(
            _gcn_kernel_resident,
            out_shape=jax.ShapeDtypeStruct((N, F_out), out_dtype),
            grid_spec=pltpu.PrefetchScalarGridSpec(
                num_scalar_prefetch=0,
                grid=grid,
                in_specs=[
                    pl.BlockSpec((tile_m, N), lambda i: (i, 0)),     # A row stripe
                    pl.BlockSpec((N, F_in), lambda i: (0, 0)),       # X resident
                    pl.BlockSpec((F_in, F_out), lambda i: (0, 0)),   # W resident
                    pl.BlockSpec((1, F_out), lambda i: (0, 0)),      # bias resident
                ],
                out_specs=pl.BlockSpec((tile_m, F_out), lambda i: (i, 0)),
            ),
            compiler_params=pltpu.CompilerParams(
                dimension_semantics=("parallel",),
                vmem_limit_bytes=vmem_limit,
            ),
            cost_estimate=pl.CostEstimate(
                flops=flops, transcendentals=0, bytes_accessed=bytes_accessed),
        )(a_bf, x_bf, w_bf, bias2d)

    # K-tiled path: X does not fit VMEM (or forced). Stream A_hat and X
    # K-slices, accumulate aggregation in a VMEM f32 scratch across the k axis.
    if tile_k is None:
        tile_k = _pick_k_tile(N)
    assert N % tile_k == 0 and (tile_k % 128 == 0 or tile_k == N)

    # Shrink tiles until they fit the per-generation VMEM budget.
    while _ktiled_vmem_bytes(tile_m, tile_k, F_in, F_out) > budget:
        if tile_k > 128 and (tile_k // 2) % 128 == 0 and N % (tile_k // 2) == 0:
            tile_k //= 2
        elif tile_m > 8 and N % (tile_m // 2) == 0:
            tile_m //= 2
        else:
            break

    grid = (N // tile_m, N // tile_k)
    bytes_accessed = (a_bf.size * 2 + x_bf.size * 2 * grid[0]  # X re-streamed
                      + param_bytes + out_bytes)
    return pl.pallas_call(
        _gcn_kernel_ktiled,
        out_shape=jax.ShapeDtypeStruct((N, F_out), out_dtype),
        grid_spec=pltpu.PrefetchScalarGridSpec(
            num_scalar_prefetch=0,
            grid=grid,
            in_specs=[
                pl.BlockSpec((tile_m, tile_k), lambda i, k: (i, k)),  # A tile
                pl.BlockSpec((tile_k, F_in), lambda i, k: (k, 0)),    # X K-slice
                pl.BlockSpec((F_in, F_out), lambda i, k: (0, 0)),     # W resident
                pl.BlockSpec((1, F_out), lambda i, k: (0, 0)),        # bias resident
            ],
            out_specs=pl.BlockSpec((tile_m, F_out), lambda i, k: (i, 0)),
            scratch_shapes=[pltpu.VMEM((tile_m, F_in), jnp.float32)],
        ),
        compiler_params=pltpu.CompilerParams(
            dimension_semantics=("parallel", "arbitrary"),
            vmem_limit_bytes=vmem_limit,
        ),
        cost_estimate=pl.CostEstimate(
            flops=flops, transcendentals=0, bytes_accessed=bytes_accessed),
    )(a_bf, x_bf, w_bf, bias2d)


# --------------------------- helpers / demo ---------------------------------


def xavier_uniform(key, fan_in, fan_out, dtype=jnp.float32):
    # Matches torch.nn.init.xavier_uniform_ (gain=1.0).
    bound = jnp.sqrt(6.0 / (fan_in + fan_out))
    return jax.random.uniform(key, (fan_in, fan_out), dtype=dtype,
                              minval=-bound, maxval=bound)


def build_normalized_adjacency(key, n, dtype=jnp.float32):
    # Deterministic random graph, symmetrized, self-loops, D^-1/2 (A+I) D^-1/2.
    a = (jax.random.uniform(key, (n, n)) < 0.05).astype(dtype)
    a = jnp.maximum(a, a.T)
    a = a + jnp.eye(n, dtype=dtype)
    deg = jnp.sum(a, axis=1)
    d_inv_sqrt = 1.0 / jnp.sqrt(deg)
    return (a * d_inv_sqrt[:, None]) * d_inv_sqrt[None, :]


if __name__ == "__main__":
    # Small GCN shapes: N nodes, in_feats -> out_feats.
    N, in_feats, out_feats = 1024, 128, 256

    key = jax.random.PRNGKey(0)
    k_adj, k_feat, k_w, k_b = jax.random.split(key, 4)

    a_hat = build_normalized_adjacency(k_adj, N).astype(jnp.bfloat16)       # [N, N]
    feats = jax.random.normal(k_feat, (N, in_feats), jnp.float32).astype(
        jnp.bfloat16)                                                        # [N, F_in]
    weight = xavier_uniform(k_w, in_feats, out_feats)                        # [F_in, F_out]
    bias = 0.1 * jax.random.normal(k_b, (out_feats,), jnp.float32)           # [F_out]

    # Resident-X fast path (auto-selected for these shapes).
    out = dist_gcn_conv(a_hat, feats, weight, bias)
    out = jax.block_until_ready(out)

    # Also exercise the K-tiled fallback path used for large N.
    out_kt = dist_gcn_conv(a_hat, feats, weight, bias,
                           force_ktiled=True, tile_m=256, tile_k=256)
    out_kt = jax.block_until_ready(out_kt)

    # Pure-JAX reference on the same bf16-rounded inputs (f32 accumulation,
    # bf16 rounding of the aggregation to mirror the bf16 finalize matmul).
    a32 = a_hat.astype(jnp.float32)
    x32 = feats.astype(jnp.float32)
    w32 = weight.astype(jnp.bfloat16).astype(jnp.float32)
    agg = (a32 @ x32).astype(jnp.bfloat16).astype(jnp.float32)
    ref = agg @ w32 + bias[None, :]

    assert out.shape == (N, out_feats)
    assert out_kt.shape == (N, out_feats)
    assert jnp.allclose(out, ref, atol=1e-2, rtol=1e-2), "resident path mismatch"
    assert jnp.allclose(out_kt, ref, atol=1e-2, rtol=1e-2), "k-tiled path mismatch"

    print("KERNEL_OK")
</pallas_src>

<mosaic_0001>
module attributes {stable_mosaic.version = 11 : i64} {
  func.func @_gcn_kernel_resident(%arg0: i32, %arg1: memref<256x1024xbf16, #tpu.memory_space<vmem>>, %arg2: memref<1024x128xbf16, #tpu.memory_space<vmem>>, %arg3: memref<128x256xbf16, #tpu.memory_space<vmem>>, %arg4: memref<1x256xf32, #tpu.memory_space<vmem>>, %arg5: memref<256x256xf32, #tpu.memory_space<vmem>>) attributes {dimension_semantics = [#tpu.dimension_semantics<parallel>], iteration_bounds = array<i64: 4>, scalar_prefetch = 0 : i64, scratch_operands = 0 : i64, tpu.core_type = #tpu.core_type<tc>, window_params = [{transform_indices = @transform_0, window_bounds = array<i64: 256, 1024>}, {pipeline_mode = #tpu.pipeline_mode<synchronous>, transform_indices = @transform_1, window_bounds = array<i64: 1024, 128>}, {pipeline_mode = #tpu.pipeline_mode<synchronous>, transform_indices = @transform_2, window_bounds = array<i64: 128, 256>}, {pipeline_mode = #tpu.pipeline_mode<synchronous>, transform_indices = @transform_3, window_bounds = array<i64: 1, 256>}, {transform_indices = @transform_4, window_bounds = array<i64: 256, 256>}]} {
    %c0 = arith.constant 0 : index
    %c0_0 = arith.constant 0 : index
    %0 = vector.load %arg1[%c0, %c0_0] : memref<256x1024xbf16, #tpu.memory_space<vmem>>, vector<256x1024xbf16>
    %c0_1 = arith.constant 0 : index
    %c0_2 = arith.constant 0 : index
    %1 = vector.load %arg2[%c0_1, %c0_2] : memref<1024x128xbf16, #tpu.memory_space<vmem>>, vector<1024x128xbf16>
    %cst = arith.constant dense<0.000000e+00> : vector<256x128xf32>
    %2 = tpu.matmul %0, %1, %cst {dimension_numbers = #tpu.dot_dimension_numbers<[1], [0], [0], [1], [0, 0, 1, 1], [], []>} : vector<256x1024xbf16>, vector<1024x128xbf16>, vector<256x128xf32> -> vector<256x128xf32>
    %3 = arith.truncf %2 : vector<256x128xf32> to vector<256x128xbf16>
    %c0_3 = arith.constant 0 : index
    %c0_4 = arith.constant 0 : index
    %4 = vector.load %arg3[%c0_3, %c0_4] : memref<128x256xbf16, #tpu.memory_space<vmem>>, vector<128x256xbf16>
    %cst_5 = arith.constant dense<0.000000e+00> : vector<256x256xf32>
    %5 = tpu.matmul %3, %4, %cst_5 {dimension_numbers = #tpu.dot_dimension_numbers<[1], [0], [0], [1], [0, 0, 1, 1], [], []>} : vector<256x128xbf16>, vector<128x256xbf16>, vector<256x256xf32> -> vector<256x256xf32>
    %c0_6 = arith.constant 0 : index
    %c0_7 = arith.constant 0 : index
    %6 = vector.load %arg4[%c0_6, %c0_7] : memref<1x256xf32, #tpu.memory_space<vmem>>, vector<1x256xf32>
    %7 = vector.broadcast %6 : vector<1x256xf32> to vector<256x256xf32>
    %8 = arith.addf %5, %7 : vector<256x256xf32>
    %c0_8 = arith.constant 0 : index
    %c0_9 = arith.constant 0 : index
    %9 = vector.load %arg5[%c0_8, %c0_9] : memref<256x256xf32, #tpu.memory_space<vmem>>, vector<256x256xf32>
    tpu.vector_store %arg5[%c0_8, %c0_9], %8 {strides = array<i32>} : memref<256x256xf32, #tpu.memory_space<vmem>>, vector<256x256xf32>,
    return
  }
  func.func @transform_0(%arg0: i32) -> (i32, i32) {
    %c0_i32 = arith.constant 0 : i32
    %c0_i32_0 = arith.constant 0 : i32
    return %arg0, %c0_i32 : i32, i32
  }
  func.func @transform_1(%arg0: i32) -> (i32, i32) {
    %c0_i32 = arith.constant 0 : i32
    %c0_i32_0 = arith.constant 0 : i32
    %c0_i32_1 = arith.constant 0 : i32
    return %c0_i32, %c0_i32_0 : i32, i32
  }
  func.func @transform_2(%arg0: i32) -> (i32, i32) {
    %c0_i32 = arith.constant 0 : i32
    %c0_i32_0 = arith.constant 0 : i32
    %c0_i32_1 = arith.constant 0 : i32
    return %c0_i32, %c0_i32_0 : i32, i32
  }
  func.func @transform_3(%arg0: i32) -> (i32, i32) {
    %c0_i32 = arith.constant 0 : i32
    %c0_i32_0 = arith.constant 0 : i32
    %c0_i32_1 = arith.constant 0 : i32
    return %c0_i32, %c0_i32_0 : i32, i32
  }
  func.func @transform_4(%arg0: i32) -> (i32, i32) {
    %c0_i32 = arith.constant 0 : i32
    %c0_i32_0 = arith.constant 0 : i32
    return %arg0, %c0_i32 : i32, i32
  }
}

</mosaic_0001>

<bundles_post_ra>
// kernel: tpu_custom_call.1
= control target key start
LH: loop header
LB: loop body
LE: loop exit
PB: predicated region body
PF: predicated region fallthrough
CT: control target
= control target key end

     0   :  { %9 = vsyncpa [#allocation3], 0  ;;  %s4627_s0 = inlined_call_operand.hbm [shape: bf16[1024,1024], index: 0, kind: input, shape index: {}]   ;;  %s4628_s1 = inlined_call_operand.hbm [shape: bf16[1024,128], index: 1, kind: input, shape index: {}]   ;;  %s4629_s2 = inlined_call_operand.hbm [shape: bf16[128,256], index: 2, kind: input, shape index: {}]   ;;  %s4630_s3 = inlined_call_operand.hbm [shape: f32[1,256], index: 3, kind: input, shape index: {}]   ;;  %s4631_s4 = inlined_call_operand.hbm [shape: f32[1024,256], index: 4, kind: output, shape index: {}]  }
   0x1   :  { %11 = vsyncpa [#allocation3 + $0x1], 0 }
   0x2   :  { %12 = vsyncpa [#allocation6], 0 }
   0x3   :  { %13 = vsyncpa [#allocation9], 0 }
   0x4   :  { %14 = vsyncpa [#allocation4], 0 }
   0x5   :  { %16 = vsyncpa [#allocation4 + $0x1], 0  ;;  %s3775_s15 = smov 0   ;;  %s3777_s16 = smov 0  }
   0x6   :  { %s3779_s17 = smov 0   ;;  %s3781_s18 = smov 0  }
   0x7 LB: > { %s3796_s19 = sadd.s32 4294967295, %s3734_s18   ;;  %s2684_s20 = sadd.s32 4294967294, %s3734_s18   ;;  %s3734_s18 = sphi %s3781_s18, %s4693_s18   ;;  %s3730_s17 = sphi %s3779_s17, %s4692_s17   ;;  %s3726_s16 = sphi %s3777_s16, %s4691_s16   ;;  %s3722_s15 = sphi %s3775_s15, %s4690_s15  }
   0x8   : > { %p42_p0 = scmp.ne.s32.totalorder %s3726_s16, %s3722_s15  ;;  %p4632_p1 = scmp.eq.s32.totalorder %s3796_s19, 0 }
   0x9   : > { %p135_p3 = scmp.eq.s32.totalorder %s2684_s20, 3  ;;  %p2685_p5 = scmp.ge.s32.totalorder %s3734_s18, 1 }
   0xa   : > { %p3805_p4 = por %p4632_p1, %p42_p0  ;;  %p142_p7 = scmp.lt.s32.totalorder %s3734_s18, 5 }
   0xb   : > { %p3810_p6 = por %p135_p3, %p42_p0  ;;  %s3736_s24 = smov [#allocation5]  }
   0xc   : > { %s4638_s21 = scalar_select %p3805_p4, 1, 0 }
   0xd   : > { %s4639_s22 = scalar_select %p3810_p6, 1, 0 }
   0xe   : > { %p3815_p8 = pnand %p2685_p5, %p142_p7  ;;  %s154_s25 = sshll.u32 %s3736_s24, 4  ;;  %s155_s25 = int_to_ptr.vmem [resolvable:$true] %s154_s25 }
   0xf   : > { %s3737_s27 = smov [#allocation7]   ;;  %s3567_s29 = scalar_lea.vmem %s155_s25, 8192 }
  0x10   : > { %s4640_s23 = scalar_select %p3815_p8, 1, 0 }
  0x11   : > { %p3398_p9 = pneg %p3815_p8  ;;  %s167_s28 = sshll.u32 %s3737_s27, 4  ;;  %s168_s28 = int_to_ptr.vmem [resolvable:$true] %s167_s28 }
  0x12   : > { %p3568_p12 = scmp.ne.s32.totalorder %s155_s25, %s3567_s29  ;;  %p3575_p3 = scmp.lt.s32.totalorder %s155_s25, %s155_s25 }
  0x13   : > { %p3823_p10 = pnand %p3398_p9, %p4632_p1  ;;  %p3576_p5 = scmp.lt.s32.totalorder %s3567_s29, %s3567_s29 }
  0x15   : > { %p3558_p11 = pneg %p3823_p10  ;;  %p3577_p7 = por %p3576_p5, %p3575_p3 }
  0x17   : > { %p3570_p13 = pnand %p3568_p12, %p3558_p11 }
  0x19   : > { %p3571_p0 = pneg %p3570_p13 }
  0x1b   : > { %p3578_p9 = pnand %p3577_p7, %p3571_p0 }
  0x1d   : > { %3581 = shalt.err (!%p3578_p9)
}
  0x1e   : > { %s3738_s30 = smov 64   ;;  %s3739_s5 = smov 4  }
  0x1f   : > { %3401 = dma.hbm_to_vmem [thread:$0]  (!%p3823_p10), %s4628_s1, 8192, %s155_s25, [#allocation6], %s3738_s30, %s3738_s30, %s3739_s5  }
  0x20   : > { %s3593_s8 = scalar_lea.vmem %s168_s28, 2048  ;;  %p3601_p2 = scmp.lt.s32.totalorder %s168_s28, %s168_s28 }
  0x21   : > { %p3594_p1 = scmp.ne.s32.totalorder %s168_s28, %s3593_s8  ;;  %p3602_p6 = scmp.lt.s32.totalorder %s3593_s8, %s3593_s8 }
  0x23   : > { %p3596_p12 = pnand %p3594_p1, %p3558_p11  ;;  %p3603_p3 = por %p3602_p6, %p3601_p2 }
  0x25   : > { %p3597_p13 = pneg %p3596_p12 }
  0x27   : > { %p3604_p0 = pnand %p3603_p3, %p3597_p13 }
  0x29   : > { %3607 = shalt.err (!%p3604_p0)
}
  0x2a   : > { %s3740_s9 = smov 128   ;;  %s3741_s10 = smov 8  }
  0x2b   : > { %3404 = dma.hbm_to_vmem [thread:$0]  (!%p3823_p10), %s4629_s2, 2048, %s168_s28, [#allocation6], %s3740_s9, %s3740_s9, %s3741_s10  }
  0x2c   : > { %s3742_s13 = smov [#allocation8]   ;;  %s3846_s20 = sadd.s32 1, %s3734_s18  }
  0x2d   : > { %s181_s14 = sshll.u32 %s3742_s13, 4  ;;  %s182_s14 = int_to_ptr.vmem [resolvable:$true] %s181_s14 }
  0x2e   : > { %s3619_s24 = scalar_lea.vmem %s182_s14, 32  ;;  %p3627_p5 = scmp.lt.s32.totalorder %s182_s14, %s182_s14 }
  0x2f   : > { %p3620_p1 = scmp.ne.s32.totalorder %s182_s14, %s3619_s24  ;;  %p3628_p7 = scmp.lt.s32.totalorder %s3619_s24, %s3619_s24 }
  0x31   : > { %p3622_p2 = pnand %p3620_p1, %p3558_p11  ;;  %p3629_p9 = por %p3628_p7, %p3627_p5 }
  0x33   : > { %p3623_p6 = pneg %p3622_p2 }
  0x35   : > { %p3630_p12 = pnand %p3629_p9, %p3623_p6 }
  0x37   : > { %3633 = shalt.err (!%p3630_p12)
}
  0x38   : > { %3407 = dma.hbm_to_vmem [thread:$0]  (!%p3823_p10), %s4630_s3, 32, %s182_s14, [#allocation9]  }
  0x39   : > { %s26_s28 = ssub.s32 %s3734_s18, %s3846_s20  ;;  %s29_s29 = sadd.s32 1, %s3730_s17 }
  0x3a   : > { %p27_p11 = scmp.eq.s32.totalorder %s26_s28, 0  ;;  %p36_p13 = scmp.ne.s32.totalorder %s3730_s17, %s3726_s16 }
  0x3b   : > { %p37_p3 = scmp.eq.s32.totalorder %s3734_s18, 0  ;;  %p3419_p0 = scmp.lt.s32.totalorder %s3734_s18, 4 }
  0x3c   : > { %s3864_s26 = scalar_select %p27_p11, %s3730_s17, %s29_s29  }
  0x3d   : > { %p38_p1 = por %p37_p3, %p36_p13  ;;  %p4642_p2 = scmp.eq.s32.totalorder %s3796_s19, 3 }
  0x3e   : > { %s192_s5 = sand.u32 1, %s3730_s17   ;;  %s2915_s6 = sshll.u32 %s3734_s18, 14 }
  0x3f   : > { %p3868_p6 = por %p4642_p2, %p36_p13  ;;  %s2690_s7 = sshll.u32 %s192_s5, 10 }
  0x40   : > { %s3877_s10 = scalar_lea.hbm %s4627_s0, %s2915_s6  ;;  %s196_s11 = scalar_lea.vmem [#allocation2], %s2690_s7 }
  0x41   : > { %s4643_s30 = scalar_select %p3868_p6, 1, 0 }
  0x42   : > { %s204_s12 = sshll.u32 %s196_s11, 4  ;;  %p3879_p10 = pnand %p3419_p0, %p38_p1  ;;  %s3883_s12 = int_to_ptr.vmem [resolvable:$true] %s204_s12 }
  0x43   : > { %s3885_s14 = scalar_lea.sflag [#allocation3], %s192_s5  ;;  %s3634_s24 = scalar_lea.hbm %s3877_s10, 16384 }
  0x44   : > { %p3635_p5 = scmp.ne.s32.totalorder %s3877_s10, %s3634_s24  ;;  %p3636_p7 = pneg %p3879_p10 }
  0x45   : > { %s3639_s28 = scalar_lea.hbm %s4627_s0, 65536  ;;  %p3640_p11 = scmp.lt.s32.totalorder %s3877_s10, %s4627_s0 }
  0x46   : > { %p3637_p9 = pnand %p3636_p7, %p3635_p5  ;;  %p3641_p13 = scmp.lt.s32.totalorder %s3639_s28, %s3634_s24 }
  0x48   : > { %p3638_p12 = pneg %p3637_p9  ;;  %p3642_p3 = por %p3641_p13, %p3640_p11 }
  0x4a   : > { %p3643_p0 = pnand %p3642_p3, %p3638_p12 }
  0x4c   : > { %3646 = shalt.err (!%p3643_p0)
}
  0x4d   : > { %s3647_s5 = scalar_lea.vmem %s3883_s12, 16384  ;;  %s3743_s7 = smov [#allocation2]  }
  0x4e   : > { %p3648_p1 = scmp.ne.s32.totalorder %s3883_s12, %s3647_s5  ;;  %s3652_s8 = sshll.u32 %s3743_s7, 4  ;;  %s3653_s8 = int_to_ptr.vmem [resolvable:$false] %s3652_s8 }
  0x4f   : > { %s3654_s9 = scalar_lea.vmem %s3653_s8, 32768  ;;  %p3655_p9 = scmp.lt.s32.totalorder %s3883_s12, %s3653_s8 }
  0x50   : > { %p3650_p2 = pnand %p3648_p1, %p3636_p7  ;;  %p3656_p6 = scmp.lt.s32.totalorder %s3654_s9, %s3647_s5 }
  0x52   : > { %p3651_p5 = pneg %p3650_p2  ;;  %p3657_p4 = por %p3656_p6, %p3655_p9 }
  0x54   : > { %p3658_p8 = pnand %p3657_p4, %p3651_p5 }
  0x56   : > { %3661 = shalt.err (!%p3658_p8)
}
  0x57   : > { %s3744_s11 = smov 512   ;;  %s3745_s24 = smov 32  }
  0x58   : > { %3411 = dma.hbm_to_vmem [thread:$0]  (!%p3879_p10), %s3877_s10, 16384, %s3883_s12, %s3885_s14, %s3744_s11, %s3744_s11, %s3745_s24  }
  0x59   : > { %p4645_p7 = scmp.ne.s32.totalorder %s4640_s23, 0 }
  0x5b   : > { %216 = sbr.rel (%p4645_p7) target bundleno = 872 (0x368), region = 36 }
  0x60   : > { %s3909_s25 = sand.u32 1, %s3726_s16   ;;  %p4646_p4 = scmp.ne.s32.totalorder %s4638_s21, 0 }
  0x61   : > { %s2695_s27 = sshll.u32 %s3909_s25, 10  ;;  %s219_s28 = scalar_lea.sflag [#allocation3], %s3909_s25 }
  0x62   : > { %s3913_s29 = scalar_lea.vmem [#allocation2], %s2695_s27 }
  0x63   : > { %3705 = dma.done.wait (%p4646_p4), %s219_s28, 16384  }
  0x64   : > { %3707 = vsyncadd (%p4646_p4), %s219_s28, 4294950912  ;;  %p4647_p8 = scmp.eq.s32.totalorder %s3796_s19, 0 }
  0x66   : > { %3709 = dma.done.wait (%p4647_p8), [#allocation6], 10240   ;;  %p4648_p6 = pmov %p4647_p8 }
  0x68   : > { %3711 = vsyncadd (%p4648_p6), [#allocation6], 4294957056  ;;  %p4649_p10 = pmov %p4648_p6 }
  0x69   : > { %p4650_p12 = pmov %p4648_p6 }
  0x6a   : > { %3713 = dma.done.wait (%p4649_p10), [#allocation9], 32  }
  0x6b   : > { %3715 = vsyncadd (%p4650_p12), [#allocation9], 4294967264  ;;  %v3468_v0 = vld [vmem:[#allocation5 + $0x78] sm:$0xff]   ;;  %v3470_v2 = vld [vmem:[#allocation5 + $0x70] sm:$0xff]   ;;  %s2699_s21 = sshll.u32 %s3909_s25, 9  ;;  %s2917_s10 = sshll.u32 %s3796_s19, 13 }
  0x6c   : > { %v3469_v1 = vld [vmem:[#allocation5 + $0x38] sm:$0xff]   ;;  %3366 = vmatprep.subr.bf16.mxu1 %v3468_v0  ;;  %2918 = vmatprep.subr.bf16.mxu0 %v3468_v0  ;;  %v3471_v3 = vld [vmem:[#allocation5 + $0x30] sm:$0xff]   ;;  %v3472_v4 = vld [vmem:[#allocation5 + $0x68] sm:$0xff]   ;;  %s4449_s23 = scalar_lea.vmem [#allocation10], %s2699_s21  ;;  %s4580_s6 = scalar_lea.hbm %s4631_s4, %s2917_s10 }
  0x6d   : > { %3374 = vmatpush3.bf16.msra.mxu1 %v3469_v1  ;;  %2919 = vmatpush3.bf16.msra.mxu0 %v3469_v1  ;;  %v3473_v5 = vld [vmem:[#allocation5 + $0x28] sm:$0xff]   ;;  %v3474_v6 = vld [vmem:[#allocation5 + $0x60] sm:$0xff]   ;;  %v3476_v8 = vld [vmem:[#allocation5 + $0x58] sm:$0xff]   ;;  %s2582_s12 = sshll.u32 %s4449_s23, 4  ;;  %s2568_s19 = scalar_lea.sflag [#allocation4], %s3909_s25  ;;  %s4582_s12 = int_to_ptr.vmem [resolvable:$true] %s2582_s12 }
  0x6e   : > { %3367 = vmatprep.subr.bf16.mxu1 %v3470_v2  ;;  %2920 = vmatprep.subr.bf16.mxu0 %v3470_v2  ;;  %v3475_v7 = vld [vmem:[#allocation5 + $0x20] sm:$0xff]   ;;  %v3477_v9 = vld [vmem:[#allocation5 + $0x18] sm:$0xff]   ;;  %v3478_v10 = vld [vmem:[#allocation5 + $0x50] sm:$0xff]   ;;  %s3662_s5 = scalar_lea.vmem %s4582_s12, 8192  ;;  %p4688_p13 = scmp.ne.s32.totalorder %s4643_s30, 0 }
  0x6f   : > { %v326_v11 = vld [vmem:[%s3913_s29 + $0x200] sm:$0xff]  ;;  %v3479_v16 = vld [vmem:[#allocation5 + $0x10] sm:$0xff]   ;;  %v3480_v18 = vld [vmem:[#allocation5 + $0x48] sm:$0xff]   ;;  %p3663_p11 = scmp.ne.s32.totalorder %s4582_s12, %s3662_s5  ;;  %s3747_s7 = smov [#allocation10]  }
  0x70   : > { %v330_v12 = vld [vmem:[%s3913_s29 + $0x220] sm:$0xff]  ;;  %v3481_v19 = vld [vmem:[#allocation5 + $0x8] sm:$0xff]   ;;  %v3484_v22 = vld [vmem:[#allocation5 + $0xf8] sm:$0xff]   ;;  %s3666_s8 = sshll.u32 %s3747_s7, 4  ;;  %s3667_s8 = int_to_ptr.vmem [resolvable:$false] %s3666_s8 }
  0x71   : > { %3375 = vmatpush3.bf16.msra.mxu1 %v3471_v3  ;;  %2921 = vmatpush3.bf16.msra.mxu0 %v3471_v3  ;;  %v2765_v13 = vcombine.high %v326_v11, %v330_v12  ;;  %v262_v14 = vld [vmem:[%s3913_s29] sm:$0xff]  ;;  %v2764_v27 = vcombine.low %v326_v11, %v330_v12  ;;  %v3485_v29 = vld [vmem:[#allocation5 + $0xb8] sm:$0xff]   ;;  %v3486_v31 = vld [vmem:[#allocation5 + $0xf0] sm:$0xff]   ;;  %p3664_p3 = pnand %p3663_p11, %p4688_p13  ;;  %s3668_s9 = scalar_lea.vmem %s3667_s8, 16384 }
  0x72   : > { %3368 = vmatprep.subr.bf16.mxu1 %v3472_v4  ;;  %2922 = vmatprep.subr.bf16.mxu0 %v3472_v4  ;;  %v266_v15 = vld [vmem:[%s3913_s29 + $0x20] sm:$0xff]  ;;  %v3487_v33 = vld [vmem:[#allocation5 + $0xb0] sm:$0xff]   ;;  %v3494_v34 = vld [vmem:[#allocation5 + $0x178] sm:$0xff]   ;;  %p3669_p1 = scmp.lt.s32.totalorder %s4582_s12, %s3667_s8  ;;  %p3670_p2 = scmp.lt.s32.totalorder %s3668_s9, %s3662_s5 }
  0x73   : > { %v2701_v17 = vcombine.high %v262_v14, %v266_v15  ;;  %1638 = vmatprep.mubr.bf16.mxu1 %v2765_v13  ;;  %v3482_v20 = vld [vmem:[#allocation5 + $0x40] sm:$0xff]   ;;  %v2700_v28 = vcombine.low %v262_v14, %v266_v15  ;;  %v3488_v37 = vld [vmem:[#allocation5 + $0xe8] sm:$0xff]   ;;  %v3495_v38 = vld [vmem:[#allocation5 + $0x138] sm:$0xff]   ;;  %p3665_p0 = pneg %p3664_p3 }
  0x74   : > { %v3483_v21 = vld [vmem:[#allocation5] sm:$0xff]   ;;  %v3496_v40 = vld [vmem:[#allocation5 + $0x170] sm:$0xff]   ;;  %v3489_v44 = vld [vmem:[#allocation5 + $0xa8] sm:$0xff]   ;;  %p3671_p5 = por %p3670_p2, %p3669_p1 }
  0x75   : > { %3376 = vmatpush3.bf16.msra.mxu1 %v3473_v5  ;;  %2923 = vmatpush3.bf16.msra.mxu0 %v3473_v5  ;;  %v334_v23 = vld [vmem:[%s3913_s29 + $0x240] sm:$0xff]  ;;  %v3497_v48 = vld [vmem:[#allocation5 + $0x130] sm:$0xff]   ;;  %v3500_v49 = vld [vmem:[#allocation5 + $0x168] sm:$0xff]  }
  0x76   : > { %3369 = vmatprep.subr.bf16.mxu1 %v3474_v6  ;;  %2924 = vmatprep.subr.bf16.mxu0 %v3474_v6  ;;  %v338_v24 = vld [vmem:[%s3913_s29 + $0x260] sm:$0xff]  ;;  %v3501_v55 = vld [vmem:[#allocation5 + $0x128] sm:$0xff]   ;;  %v3492_v56 = vld [vmem:[#allocation5 + $0xd8] sm:$0xff]   ;;  %p3672_p9 = pnand %p3671_p5, %p3665_p0 }
  0x77   : > { %1574 = vmatprep.mubr.bf16.mxu0 %v2701_v17  ;;  %v270_v25 = vld [vmem:[%s3913_s29 + $0x40] sm:$0xff]  ;;  %v2773_v30 = vcombine.high %v334_v23, %v338_v24  ;;  %v2772_v42 = vcombine.low %v334_v23, %v338_v24  ;;  %v3493_v60 = vld [vmem:[#allocation5 + $0x98] sm:$0xff]   ;;  %v3498_v63 = vld [vmem:[#allocation5 + $0xd0] sm:$0xff]  }
  0x78   : > { %v274_v26 = vld [vmem:[%s3913_s29 + $0x60] sm:$0xff]  ;;  %v3506_v1 = vld [vmem:[#allocation5 + $0x158] sm:$0xff]   ;;  %v3499_v6 = vld [vmem:[#allocation5 + $0x90] sm:$0xff]  }
  0x79   : > { %3377 = vmatpush3.bf16.msra.mxu1 %v3475_v7  ;;  %2925 = vmatpush3.bf16.msra.mxu0 %v3475_v7  ;;  %v2709_v32 = vcombine.high %v270_v25, %v274_v26  ;;  %v342_v35 = vld [vmem:[%s3913_s29 + $0x280] sm:$0xff]  ;;  %v2708_v43 = vcombine.low %v270_v25, %v274_v26  ;;  %v3507_v7 = vld [vmem:[#allocation5 + $0x118] sm:$0xff]   ;;  %v3505_v14 = vld [vmem:[#allocation5 + $0x88] sm:$0xff]  }
  0x7a   : > { %3370 = vmatprep.subr.bf16.mxu1 %v3476_v8  ;;  %2926 = vmatprep.subr.bf16.mxu0 %v3476_v8  ;;  %v346_v36 = vld [vmem:[%s3913_s29 + $0x2a0] sm:$0xff]  ;;  %v3504_v8 = vld [vmem:[#allocation5 + $0xc8] sm:$0xff]   ;;  %v3509_v15 = vld [vmem:[#allocation5 + $0x110] sm:$0xff]  }
  0x7b   : > { %v278_v39 = vld [vmem:[%s3913_s29 + $0x80] sm:$0xff]  ;;  %v2781_v45 = vcombine.high %v342_v35, %v346_v36  ;;  %v2780_v58 = vcombine.low %v342_v35, %v346_v36  ;;  %v3512_v17 = vld [vmem:[#allocation5 + $0x148] sm:$0xff]   ;;  %v3516_v25 = vld [vmem:[#allocation5 + $0x1f8] sm:$0xff]  }
  0x7c   : > { %v282_v41 = vld [vmem:[%s3913_s29 + $0xa0] sm:$0xff]  ;;  %v3513_v23 = vld [vmem:[#allocation5 + $0x108] sm:$0xff]  }
  0x7d   : > { %3378 = vmatpush3.bf16.msra.mxu1 %v3477_v9  ;;  %2927 = vmatpush3.bf16.msra.mxu0 %v3477_v9  ;;  %v2717_v46 = vcombine.high %v278_v39, %v282_v41  ;;  %v3490_v47 = vld [vmem:[#allocation5 + $0xe0] sm:$0xff]   ;;  %v2716_v59 = vcombine.low %v278_v39, %v282_v41  ;;  %v3508_v9 = vld [vmem:[#allocation5 + $0x150] sm:$0xff]  }
  0x7e   : > { %3371 = vmatprep.subr.bf16.mxu1 %v3478_v10  ;;  %2928 = vmatprep.subr.bf16.mxu0 %v3478_v10  ;;  %v350_v50 = vld [vmem:[%s3913_s29 + $0x2c0] sm:$0xff] }
  0x7f   : > { %v354_v51 = vld [vmem:[%s3913_s29 + $0x2e0] sm:$0xff] }
  0x80   : > { %v286_v52 = vld [vmem:[%s3913_s29 + $0xc0] sm:$0xff]  ;;  %v2789_v61 = vcombine.high %v350_v50, %v354_v51  ;;  %v2788_v10 = vcombine.low %v350_v50, %v354_v51  ;;  %v268_v50 = vld [vmem:[%s3913_s29 + $0x30] sm:$0xff] }
  0x81   : > { %3379 = vmatpush3.bf16.msra.mxu1 %v3479_v16  ;;  %2929 = vmatpush3.bf16.msra.mxu0 %v3479_v16  ;;  %v290_v53 = vld [vmem:[%s3913_s29 + $0xe0] sm:$0xff] }
  0x82   : > { %3372 = vmatprep.subr.bf16.mxu1 %v3480_v18  ;;  %2930 = vmatprep.subr.bf16.mxu0 %v3480_v18  ;;  %v3491_v54 = vld [vmem:[#allocation5 + $0xa0] sm:$0xff]   ;;  %v2725_v62 = vcombine.high %v286_v52, %v290_v53  ;;  %v2724_v11 = vcombine.low %v286_v52, %v290_v53 }
  0x83   : > { %v3502_v57 = vld [vmem:[#allocation5 + $0x160] sm:$0xff]  }
  0x84   : > { %v3503_v0 = vld [vmem:[#allocation5 + $0x120] sm:$0xff]  }
  0x85   : > { %3380 = vmatpush3.bf16.msra.mxu1 %v3481_v19  ;;  %2931 = vmatpush3.bf16.msra.mxu0 %v3481_v19  ;;  %v358_v2 = vld [vmem:[%s3913_s29 + $0x300] sm:$0xff] }
  0x86   : > { %3373 = vmatprep.subr.bf16.mxu1 %v3482_v20  ;;  %2932 = vmatprep.subr.bf16.mxu0 %v3482_v20  ;;  %v362_v3 = vld [vmem:[%s3913_s29 + $0x320] sm:$0xff] }
  0x87   : > { %v294_v4 = vld [vmem:[%s3913_s29 + $0x100] sm:$0xff]  ;;  %v2797_v12 = vcombine.high %v358_v2, %v362_v3  ;;  %v2796_v26 = vcombine.low %v358_v2, %v362_v3  ;;  %v279_v2 = vld [vmem:[%s3913_s29 + $0x88] sm:$0xff] }
  0x88   : > { %v298_v5 = vld [vmem:[%s3913_s29 + $0x120] sm:$0xff]  ;;  %v283_v3 = vld [vmem:[%s3913_s29 + $0xa8] sm:$0xff] }
  0x89   : > { %3381 = vmatpush3.bf16.msra.mxu1 %v3483_v21  ;;  %2933 = vmatpush3.bf16.msra.mxu0 %v3483_v21  ;;  %v2733_v13 = vcombine.high %v294_v4, %v298_v5  ;;  %v3510_v16 = vld [vmem:[#allocation5 + $0xc0] sm:$0xff]  }
  0x8a   : > { %3030 = vmatprep.subr.bf16.mxu1 %v3484_v22  ;;  %3142 = vmatprep.subr.bf16.mxu0 %v3494_v34  ;;  %v366_v18 = vld [vmem:[%s3913_s29 + $0x340] sm:$0xff] }
  0x8b   : > { %v370_v19 = vld [vmem:[%s3913_s29 + $0x360] sm:$0xff] }
  0x8c   : > { %1639 = vmatmul.mubr.bf16.vlgmr.msra.gmra.mxu1 %v2764_v27  ;;  %1575 = vmatmul.mubr.bf16.vlgmr.msra.gmra.mxu0 %v2700_v28  ;;  %v302_v20 = vld [vmem:[%s3913_s29 + $0x140] sm:$0xff]  ;;  %v2732_v27 = vcombine.low %v294_v4, %v298_v5  ;;  %v2805_v28 = vcombine.high %v366_v18, %v370_v19  ;;  %v2804_v35 = vcombine.low %v366_v18, %v370_v19  ;;  %v280_v4 = vld [vmem:[%s3913_s29 + $0x90] sm:$0xff]  ;;  %v3524_v18 = vld [vmem:[#allocation5 + $0x1d8] sm:$0xff]  }
  0x8d   : > { %3031 = vmatpush3.bf16.msra.mxu1 %v3485_v29  ;;  %1646 = vmatprep.mubr.bf16.mxu1 %v2773_v30  ;;  %v306_v21 = vld [vmem:[%s3913_s29 + $0x160] sm:$0xff]  ;;  %v284_v5 = vld [vmem:[%s3913_s29 + $0xb0] sm:$0xff]  ;;  %v2718_v19 = vcombine.low %v279_v2, %v283_v3 }
  0x8e   : > { %3032 = vmatprep.subr.bf16.mxu1 %v3486_v31  ;;  %1582 = vmatprep.mubr.bf16.mxu0 %v2709_v32  ;;  %v3511_v22 = vld [vmem:[#allocation5 + $0x80] sm:$0xff]   ;;  %v2741_v29 = vcombine.high %v302_v20, %v306_v21  ;;  %v2740_v36 = vcombine.low %v302_v20, %v306_v21  ;;  %v2720_v20 = vcombine.low %v280_v4, %v284_v5 }
  0x8f   : > { %3143 = vmatpush3.bf16.msra.mxu0 %v3495_v38  ;;  %v3514_v24 = vld [vmem:[#allocation5 + $0x140] sm:$0xff]  }
  0x90   : > { %3144 = vmatprep.subr.bf16.mxu0 %v3496_v40  ;;  %v3515_v30 = vld [vmem:[#allocation5 + $0x100] sm:$0xff]  }
  0x91   : > { %3033 = vmatpush3.bf16.msra.mxu1 %v3487_v33  ;;  %v374_v31 = vld [vmem:[%s3913_s29 + $0x380] sm:$0xff] }
  0x92   : > { %3034 = vmatprep.subr.bf16.mxu1 %v3488_v37  ;;  %v378_v32 = vld [vmem:[%s3913_s29 + $0x3a0] sm:$0xff] }
  0x93   : > { %3145 = vmatpush3.bf16.msra.mxu0 %v3497_v48  ;;  %v310_v33 = vld [vmem:[%s3913_s29 + $0x180] sm:$0xff]  ;;  %v2813_v37 = vcombine.high %v374_v31, %v378_v32  ;;  %v267_v48 = vld [vmem:[%s3913_s29 + $0x28] sm:$0xff] }
  0x94   : > { %1647 = vmatmul.mubr.bf16.gmra.mxu1 %v2772_v42  ;;  %1583 = vmatmul.mubr.bf16.gmra.mxu0 %v2708_v43  ;;  %v314_v34 = vld [vmem:[%s3913_s29 + $0x1a0] sm:$0xff]  ;;  %v2812_v43 = vcombine.low %v374_v31, %v378_v32 }
  0x95   : > { %1654 = vmatprep.mubr.bf16.mxu1 %v2781_v45  ;;  %1590 = vmatprep.mubr.bf16.mxu0 %v2717_v46  ;;  %v2749_v38 = vcombine.high %v310_v33, %v314_v34  ;;  %v382_v39 = vld [vmem:[%s3913_s29 + $0x3c0] sm:$0xff] }
  0x96   : > { %3035 = vmatpush3.bf16.msra.mxu1 %v3489_v44  ;;  %3146 = vmatprep.subr.bf16.mxu0 %v3500_v49  ;;  %v386_v40 = vld [vmem:[%s3913_s29 + $0x3e0] sm:$0xff]  ;;  %v2748_v44 = vcombine.low %v310_v33, %v314_v34  ;;  %v264_v49 = vld [vmem:[%s3913_s29 + $0x10] sm:$0xff] }
  0x97   : > { %3036 = vmatprep.subr.bf16.mxu1 %v3490_v47  ;;  %3147 = vmatpush3.bf16.msra.mxu0 %v3501_v55  ;;  %v318_v41 = vld [vmem:[%s3913_s29 + $0x1c0] sm:$0xff]  ;;  %v2821_v45 = vcombine.high %v382_v39, %v386_v40  ;;  %v263_v47 = vld [vmem:[%s3913_s29 + $0x8] sm:$0xff]  ;;  %v2820_v51 = vcombine.low %v382_v39, %v386_v40  ;;  %v304_v39 = vld [vmem:[%s3913_s29 + $0x150] sm:$0xff] }
  0x98   : > { %3148 = vmatprep.subr.bf16.mxu0 %v3502_v57  ;;  %v322_v42 = vld [vmem:[%s3913_s29 + $0x1e0] sm:$0xff]  ;;  %v2703_v53 = vcombine.high %v263_v47, %v267_v48  ;;  %v271_v55 = vld [vmem:[%s3913_s29 + $0x48] sm:$0xff]  ;;  %v272_v57 = vld [vmem:[%s3913_s29 + $0x50] sm:$0xff] }
  0x99   : > { %v2757_v46 = vcombine.high %v318_v41, %v322_v42  ;;  %v2756_v52 = vcombine.low %v318_v41, %v322_v42  ;;  %v308_v40 = vld [vmem:[%s3913_s29 + $0x170] sm:$0xff]  ;;  %v3531_v41 = vld [vmem:[#allocation5 + $0x180] sm:$0xff]  }
  0x9a   : > { %3037 = vmatpush3.bf16.msra.mxu1 %v3491_v54  ;;  %v2705_v54 = vcombine.high %v264_v49, %v268_v50 }
  0x9b   : > { %3038 = vmatprep.subr.bf16.mxu1 %v3492_v56  ;;  %3149 = vmatpush3.bf16.msra.mxu0 %v3503_v0  ;;  %v275_v56 = vld [vmem:[%s3913_s29 + $0x68] sm:$0xff]  ;;  %v3518_v0 = vld [vmem:[#allocation5 + $0x1f0] sm:$0xff]  }
  0x9c   : > { %1655 = vmatmul.mubr.bf16.gmra.mxu1 %v2780_v58  ;;  %1591 = vmatmul.mubr.bf16.gmra.mxu0 %v2716_v59  ;;  %v276_v58 = vld [vmem:[%s3913_s29 + $0x70] sm:$0xff]  ;;  %v2702_v59 = vcombine.low %v263_v47, %v267_v48  ;;  %v315_v47 = vld [vmem:[%s3913_s29 + $0x1a8] sm:$0xff] }
  0x9d   : > { %1662 = vmatprep.mubr.bf16.mxu1 %v2789_v61  ;;  %1598 = vmatprep.mubr.bf16.mxu0 %v2725_v62  ;;  %v3517_v61 = vld [vmem:[#allocation5 + $0x1b8] sm:$0xff]   ;;  %v2711_v62 = vcombine.high %v271_v55, %v275_v56  ;;  %v312_v48 = vld [vmem:[%s3913_s29 + $0x190] sm:$0xff] }
  0x9e   : > { %3039 = vmatpush3.bf16.msra.mxu1 %v3493_v60  ;;  %3150 = vmatprep.subr.bf16.mxu0 %v3506_v1  ;;  %v2704_v60 = vcombine.low %v264_v49, %v268_v50  ;;  %v3519_v1 = vld [vmem:[#allocation5 + $0x1b0] sm:$0xff]  }
  0x9f   : > { %3040 = vmatprep.subr.bf16.mxu1 %v3498_v63  ;;  %3151 = vmatpush3.bf16.msra.mxu0 %v3507_v7  ;;  %v2713_v63 = vcombine.high %v272_v57, %v276_v58  ;;  %v2710_v7 = vcombine.low %v271_v55, %v275_v56  ;;  %v316_v49 = vld [vmem:[%s3913_s29 + $0x1b0] sm:$0xff]  ;;  %v323_v55 = vld [vmem:[%s3913_s29 + $0x1e8] sm:$0xff] }
  0xa0   : > { %3152 = vmatprep.subr.bf16.mxu0 %v3508_v9  ;;  %v2719_v9 = vcombine.high %v279_v2, %v283_v3  ;;  %v320_v56 = vld [vmem:[%s3913_s29 + $0x1d0] sm:$0xff] }
  0xa2   : > { %3041 = vmatpush3.bf16.msra.mxu1 %v3499_v6  ;;  %v3520_v6 = vld [vmem:[#allocation5 + $0x1e8] sm:$0xff]  }
  0xa3   : > { %3042 = vmatprep.subr.bf16.mxu1 %v3504_v8  ;;  %3153 = vmatpush3.bf16.msra.mxu0 %v3509_v15  ;;  %v2712_v8 = vcombine.low %v272_v57, %v276_v58  ;;  %v288_v15 = vld [vmem:[%s3913_s29 + $0xd0] sm:$0xff] }
  0xa4   : > { %1663 = vmatmul.mubr.bf16.gmra.mxu1 %v2788_v10  ;;  %1599 = vmatmul.mubr.bf16.gmra.mxu0 %v2724_v11  ;;  %v2721_v10 = vcombine.high %v280_v4, %v284_v5  ;;  %v3521_v11 = vld [vmem:[#allocation5 + $0x1a8] sm:$0xff]   ;;  %v324_v57 = vld [vmem:[%s3913_s29 + $0x1f0] sm:$0xff] }
  0xa5   : > { %1670 = vmatprep.mubr.bf16.mxu1 %v2797_v12  ;;  %1606 = vmatprep.mubr.bf16.mxu0 %v2733_v13  ;;  %v3522_v12 = vld [vmem:[#allocation5 + $0x1e0] sm:$0xff]   ;;  %v287_v13 = vld [vmem:[%s3913_s29 + $0xc8] sm:$0xff]  ;;  %v2760_v3 = vcombine.low %v320_v56, %v324_v57 }
  0xa6   : > { %3043 = vmatpush3.bf16.msra.mxu1 %v3505_v14  ;;  %3154 = vmatprep.subr.bf16.mxu0 %v3512_v17  ;;  %v291_v14 = vld [vmem:[%s3913_s29 + $0xe8] sm:$0xff]  ;;  %v3523_v17 = vld [vmem:[#allocation5 + $0x1a0] sm:$0xff]  }
  0xa7   : > { %3044 = vmatprep.subr.bf16.mxu1 %v3510_v16  ;;  %3155 = vmatpush3.bf16.msra.mxu0 %v3513_v23  ;;  %v292_v16 = vld [vmem:[%s3913_s29 + $0xf0] sm:$0xff]  ;;  %v2727_v21 = vcombine.high %v287_v13, %v291_v14  ;;  %v3525_v23 = vld [vmem:[#allocation5 + $0x198] sm:$0xff]   ;;  %v2726_v31 = vcombine.low %v287_v13, %v291_v14  ;;  %v343_v14 = vld [vmem:[%s3913_s29 + $0x288] sm:$0xff] }
  0xa8   : > { %3156 = vmatprep.subr.bf16.mxu0 %v3514_v24  ;;  %v3526_v24 = vld [vmem:[#allocation5 + $0x1d0] sm:$0xff]   ;;  %v2728_v32 = vcombine.low %v288_v15, %v292_v16 }
  0xaa   : > { %3045 = vmatpush3.bf16.msra.mxu1 %v3511_v22  ;;  %v2729_v22 = vcombine.high %v288_v15, %v292_v16  ;;  %v347_v15 = vld [vmem:[%s3913_s29 + $0x2a8] sm:$0xff]  ;;  %v344_v16 = vld [vmem:[%s3913_s29 + $0x290] sm:$0xff] }
  0xab   : > { %3254 = vmatprep.subr.bf16.mxu1 %v3516_v25  ;;  %3157 = vmatpush3.bf16.msra.mxu0 %v3515_v30  ;;  %v295_v25 = vld [vmem:[%s3913_s29 + $0x108] sm:$0xff] }
  0xac   : > { %1671 = vmatmul.mubr.bf16.gmra.mxu1 %v2796_v26  ;;  %1607 = vmatmul.mubr.bf16.gmra.mxu0 %v2732_v27  ;;  %v299_v26 = vld [vmem:[%s3913_s29 + $0x128] sm:$0xff]  ;;  %v296_v27 = vld [vmem:[%s3913_s29 + $0x110] sm:$0xff] }
  0xad   : > { %1678 = vmatprep.mubr.bf16.mxu1 %v2805_v28  ;;  %1614 = vmatprep.mubr.bf16.mxu0 %v2741_v29  ;;  %v300_v28 = vld [vmem:[%s3913_s29 + $0x130] sm:$0xff]  ;;  %v3528_v30 = vld [vmem:[#allocation5 + $0x1c8] sm:$0xff]   ;;  %v2735_v33 = vcombine.high %v295_v25, %v299_v26  ;;  %v2734_v42 = vcombine.low %v295_v25, %v299_v26  ;;  %v2782_v26 = vcombine.low %v343_v14, %v347_v15 }
  0xae   : > { %v3527_v29 = vld [vmem:[#allocation5 + $0x190] sm:$0xff]   ;;  %v2737_v34 = vcombine.high %v296_v27, %v300_v28 }
  0xaf   : > { %v356_v25 = vld [vmem:[%s3913_s29 + $0x2f0] sm:$0xff] }
  0xb4   : > { %1679 = vmatmul.mubr.bf16.gmra.mxu1 %v2804_v35  ;;  %1615 = vmatmul.mubr.bf16.gmra.mxu0 %v2740_v36  ;;  %v3529_v35 = vld [vmem:[#allocation5 + $0x188] sm:$0xff]   ;;  %v3530_v36 = vld [vmem:[#allocation5 + $0x1c0] sm:$0xff]  }
  0xb5   : > { %1686 = vmatprep.mubr.bf16.mxu1 %v2813_v37  ;;  %1622 = vmatprep.mubr.bf16.mxu0 %v2749_v38  ;;  %v303_v37 = vld [vmem:[%s3913_s29 + $0x148] sm:$0xff] }
  0xb6   : > { %v307_v38 = vld [vmem:[%s3913_s29 + $0x168] sm:$0xff] }
  0xb7   : > { %v2742_v50 = vcombine.low %v303_v37, %v307_v38 }
  0xbc   : > { %1687 = vmatmul.mubr.bf16.gmra.mxu1 %v2812_v43  ;;  %1623 = vmatmul.mubr.bf16.gmra.mxu0 %v2748_v44  ;;  %v2736_v43 = vcombine.low %v296_v27, %v300_v28  ;;  %v2743_v44 = vcombine.high %v303_v37, %v307_v38 }
  0xbd   : > { %1694 = vmatprep.mubr.bf16.mxu1 %v2821_v45  ;;  %1630 = vmatprep.mubr.bf16.mxu0 %v2757_v46  ;;  %v2745_v45 = vcombine.high %v304_v39, %v308_v40  ;;  %v311_v46 = vld [vmem:[%s3913_s29 + $0x188] sm:$0xff] }
  0xbe   : > { %v2750_v58 = vcombine.low %v311_v46, %v315_v47 }
  0xc4   : > { %1695 = vmatmul.mubr.bf16.gmra.mxu1 %v2820_v51  ;;  %1631 = vmatmul.mubr.bf16.gmra.mxu0 %v2756_v52  ;;  %v2744_v51 = vcombine.low %v304_v39, %v308_v40  ;;  %v2751_v52 = vcombine.high %v311_v46, %v315_v47  ;;  %v367_v40 = vld [vmem:[%s3913_s29 + $0x348] sm:$0xff] }
  0xc5   : > { %1735 = vmatprep.mubr.bf16.mxu1 %v2703_v53  ;;  %1896 = vmatprep.mubr.bf16.mxu0 %v2705_v54  ;;  %v2753_v53 = vcombine.high %v312_v48, %v316_v49  ;;  %v319_v54 = vld [vmem:[%s3913_s29 + $0x1c8] sm:$0xff] }
  0xc6   : > { %v2758_v2 = vcombine.low %v319_v54, %v323_v55 }
  0xcc   : > { %1736 = vmatmul.mubr.bf16.vlgmr.msra.gmra.mxu1 %v2702_v59  ;;  %1897 = vmatmul.mubr.bf16.vlgmr.msra.gmra.mxu0 %v2704_v60  ;;  %v2752_v59 = vcombine.low %v312_v48, %v316_v49  ;;  %v2759_v60 = vcombine.high %v319_v54, %v323_v55  ;;  %v3535_v48 = vld [vmem:[#allocation7 + $0x60] ss:$8 sps:$4 sm:$0xff]   ;;  %v3537_v49 = vld [vmem:[#allocation7 + $0x64] ss:$8 sps:$4 sm:$0xff]  }
  0xcd   : > { %3255 = vmatpush3.bf16.msra.mxu1 %v3517_v61  ;;  %1743 = vmatprep.mubr.bf16.mxu1 %v2711_v62  ;;  %v2761_v61 = vcombine.high %v320_v56, %v324_v57  ;;  %v327_v62 = vld [vmem:[%s3913_s29 + $0x208] sm:$0xff] }
  0xce   : > { %1904 = vmatprep.mubr.bf16.mxu0 %v2713_v63  ;;  %3256 = vmatprep.subr.bf16.mxu1 %v3518_v0  ;;  %v331_v63 = vld [vmem:[%s3913_s29 + $0x228] sm:$0xff]  ;;  %v328_v0 = vld [vmem:[%s3913_s29 + $0x210] sm:$0xff] }
  0xcf   : > { %v2767_v4 = vcombine.high %v327_v62, %v331_v63 }
  0xd1   : > { %3257 = vmatpush3.bf16.msra.mxu1 %v3519_v1  ;;  %v332_v1 = vld [vmem:[%s3913_s29 + $0x230] sm:$0xff] }
  0xd2   : > { %3258 = vmatprep.subr.bf16.mxu1 %v3520_v6  ;;  %v2769_v5 = vcombine.high %v328_v0, %v332_v1  ;;  %v335_v6 = vld [vmem:[%s3913_s29 + $0x248] sm:$0xff] }
  0xd4   : > { %1744 = vmatmul.mubr.bf16.gmra.mxu1 %v2710_v7  ;;  %1905 = vmatmul.mubr.bf16.gmra.mxu0 %v2712_v8  ;;  %v339_v7 = vld [vmem:[%s3913_s29 + $0x268] sm:$0xff]  ;;  %v336_v8 = vld [vmem:[%s3913_s29 + $0x250] sm:$0xff] }
  0xd5   : > { %1751 = vmatprep.mubr.bf16.mxu1 %v2719_v9  ;;  %1912 = vmatprep.mubr.bf16.mxu0 %v2721_v10  ;;  %v340_v9 = vld [vmem:[%s3913_s29 + $0x270] sm:$0xff]  ;;  %v2766_v10 = vcombine.low %v327_v62, %v331_v63 }
  0xd6   : > { %3259 = vmatpush3.bf16.msra.mxu1 %v3521_v11  ;;  %v2768_v11 = vcombine.low %v328_v0, %v332_v1  ;;  %v2777_v13 = vcombine.high %v336_v8, %v340_v9 }
  0xd7   : > { %3260 = vmatprep.subr.bf16.mxu1 %v3522_v12  ;;  %v2775_v12 = vcombine.high %v335_v6, %v339_v7 }
  0xda   : > { %3261 = vmatpush3.bf16.msra.mxu1 %v3523_v17  ;;  %v348_v17 = vld [vmem:[%s3913_s29 + $0x2b0] sm:$0xff] }
  0xdb   : > { %3262 = vmatprep.subr.bf16.mxu1 %v3524_v18  ;;  %v2774_v18 = vcombine.low %v335_v6, %v339_v7  ;;  %v2784_v27 = vcombine.low %v344_v16, %v348_v17 }
  0xdc   : > { %1752 = vmatmul.mubr.bf16.gmra.mxu1 %v2718_v19  ;;  %1913 = vmatmul.mubr.bf16.gmra.mxu0 %v2720_v20  ;;  %v2776_v19 = vcombine.low %v336_v8, %v340_v9  ;;  %v2783_v20 = vcombine.high %v343_v14, %v347_v15  ;;  %v273_v9 = vld [vmem:[%s3913_s29 + $0x58] sm:$0xff]  ;;  %v3543_v14 = vld [vmem:[#allocation7 + $0x44] ss:$8 sps:$4 sm:$0xff]  }
  0xdd   : > { %1759 = vmatprep.mubr.bf16.mxu1 %v2727_v21  ;;  %1920 = vmatprep.mubr.bf16.mxu0 %v2729_v22  ;;  %v2785_v21 = vcombine.high %v344_v16, %v348_v17  ;;  %v351_v22 = vld [vmem:[%s3913_s29 + $0x2c8] sm:$0xff] }
  0xde   : > { %3263 = vmatpush3.bf16.msra.mxu1 %v3525_v23  ;;  %v355_v23 = vld [vmem:[%s3913_s29 + $0x2e8] sm:$0xff] }
  0xdf   : > { %3264 = vmatprep.subr.bf16.mxu1 %v3526_v24  ;;  %v352_v24 = vld [vmem:[%s3913_s29 + $0x2d0] sm:$0xff]  ;;  %v2791_v28 = vcombine.high %v351_v22, %v355_v23 }
  0xe0   : > { %v2792_v37 = vcombine.low %v352_v24, %v356_v25 }
  0xe2   : > { %3265 = vmatpush3.bf16.msra.mxu1 %v3527_v29  ;;  %v2793_v29 = vcombine.high %v352_v24, %v356_v25 }
  0xe3   : > { %3266 = vmatprep.subr.bf16.mxu1 %v3528_v30  ;;  %v3532_v30 = vld [vmem:[#allocation7 + $0x70] ss:$8 sps:$4 sm:$0xff]  }
  0xe4   : > { %1760 = vmatmul.mubr.bf16.gmra.mxu1 %v2726_v31  ;;  %1921 = vmatmul.mubr.bf16.gmra.mxu0 %v2728_v32  ;;  %v3534_v31 = vld [vmem:[#allocation7 + $0x74] ss:$8 sps:$4 sm:$0xff]   ;;  %v359_v32 = vld [vmem:[%s3913_s29 + $0x308] sm:$0xff] }
  0xe5   : > { %1767 = vmatprep.mubr.bf16.mxu1 %v2735_v33  ;;  %1928 = vmatprep.mubr.bf16.mxu0 %v2737_v34  ;;  %v363_v33 = vld [vmem:[%s3913_s29 + $0x328] sm:$0xff]  ;;  %v360_v34 = vld [vmem:[%s3913_s29 + $0x310] sm:$0xff] }
  0xe6   : > { %3267 = vmatpush3.bf16.msra.mxu1 %v3529_v35  ;;  %v364_v35 = vld [vmem:[%s3913_s29 + $0x330] sm:$0xff]  ;;  %2310 = vmatprep.subr.bf16.mxu0 %v3534_v31  ;;  %v2799_v38 = vcombine.high %v359_v32, %v363_v33 }
  0xe7   : > { %3268 = vmatprep.subr.bf16.mxu1 %v3530_v36  ;;  %2311 = vmatpush1.bf16.msra.mxu0 %v3532_v30  ;;  %v2790_v36 = vcombine.low %v351_v22, %v355_v23  ;;  %v2801_v39 = vcombine.high %v360_v34, %v364_v35 }
  0xe8   : > { %2312 = vmatprep.subr.bf16.mxu0 %v3537_v49 }
  0xea   : > { %3269 = vmatpush3.bf16.msra.mxu1 %v3531_v41  ;;  %v371_v41 = vld [vmem:[%s3913_s29 + $0x368] sm:$0xff] }
  0xeb   : > { %v2807_v46 = vcombine.high %v367_v40, %v371_v41  ;;  %2313 = vmatpush1.bf16.msra.mxu0 %v3535_v48  ;;  %v2806_v54 = vcombine.low %v367_v40, %v371_v41 }
  0xec   : > { %1768 = vmatmul.mubr.bf16.gmra.mxu1 %v2734_v42  ;;  %1929 = vmatmul.mubr.bf16.gmra.mxu0 %v2736_v43  ;;  %v368_v42 = vld [vmem:[%s3913_s29 + $0x350] sm:$0xff] }
  0xed   : > { %1775 = vmatprep.mubr.bf16.mxu1 %v2743_v44  ;;  %1936 = vmatprep.mubr.bf16.mxu0 %v2745_v45  ;;  %v372_v43 = vld [vmem:[%s3913_s29 + $0x370] sm:$0xff]  ;;  %v2798_v44 = vcombine.low %v359_v32, %v363_v33  ;;  %v2800_v45 = vcombine.low %v360_v34, %v364_v35  ;;  %v289_v34 = vld [vmem:[%s3913_s29 + $0xd8] sm:$0xff] }
  0xee   : > { %v2809_v47 = vcombine.high %v368_v42, %v372_v43  ;;  %v2808_v55 = vcombine.low %v368_v42, %v372_v43  ;;  %v293_v35 = vld [vmem:[%s3913_s29 + $0xf8] sm:$0xff] }
  0xef   : > { %v2731_v41 = vcombine.high %v289_v34, %v293_v35 }
  0xf4   : > { %1776 = vmatmul.mubr.bf16.gmra.mxu1 %v2742_v50  ;;  %1937 = vmatmul.mubr.bf16.gmra.mxu0 %v2744_v51  ;;  %v375_v50 = vld [vmem:[%s3913_s29 + $0x388] sm:$0xff] }
  0xf5   : > { %1783 = vmatprep.mubr.bf16.mxu1 %v2751_v52  ;;  %1944 = vmatprep.mubr.bf16.mxu0 %v2753_v53  ;;  %v379_v51 = vld [vmem:[%s3913_s29 + $0x3a8] sm:$0xff]  ;;  %v376_v52 = vld [vmem:[%s3913_s29 + $0x390] sm:$0xff] }
  0xf6   : > { %v380_v53 = vld [vmem:[%s3913_s29 + $0x3b0] sm:$0xff]  ;;  %v2815_v56 = vcombine.high %v375_v50, %v379_v51  ;;  %v2814_v62 = vcombine.low %v375_v50, %v379_v51  ;;  %v297_v51 = vld [vmem:[%s3913_s29 + $0x118] sm:$0xff] }
  0xf7   : > { %v2817_v57 = vcombine.high %v376_v52, %v380_v53  ;;  %v2816_v63 = vcombine.low %v376_v52, %v380_v53  ;;  %v301_v52 = vld [vmem:[%s3913_s29 + $0x138] sm:$0xff] }
  0xfc   : > { %1784 = vmatmul.mubr.bf16.gmra.mxu1 %v2750_v58  ;;  %1945 = vmatmul.mubr.bf16.gmra.mxu0 %v2752_v59  ;;  %v383_v58 = vld [vmem:[%s3913_s29 + $0x3c8] sm:$0xff] }
  0xfd   : > { %1791 = vmatprep.mubr.bf16.mxu1 %v2759_v60  ;;  %1952 = vmatprep.mubr.bf16.mxu0 %v2761_v61  ;;  %v387_v59 = vld [vmem:[%s3913_s29 + $0x3e8] sm:$0xff]  ;;  %v384_v60 = vld [vmem:[%s3913_s29 + $0x3d0] sm:$0xff] }
  0xfe   : > { %v388_v61 = vld [vmem:[%s3913_s29 + $0x3f0] sm:$0xff]  ;;  %v2823_v0 = vcombine.high %v383_v58, %v387_v59  ;;  %v2822_v6 = vcombine.low %v383_v58, %v387_v59  ;;  %v2739_v58 = vcombine.high %v297_v51, %v301_v52 }
  0xff   : > { %v2825_v1 = vcombine.high %v384_v60, %v388_v61  ;;  %v2824_v7 = vcombine.low %v384_v60, %v388_v61 }
 0x104   : > { %1792 = vmatmul.mubr.bf16.gmra.mxu1 %v2758_v2  ;;  %1953 = vmatmul.mubr.bf16.gmra.mxu0 %v2760_v3  ;;  %v3538_v2 = vld [vmem:[#allocation7 + $0x50] ss:$8 sps:$4 sm:$0xff]   ;;  %v3540_v3 = vld [vmem:[#allocation7 + $0x54] ss:$8 sps:$4 sm:$0xff]  }
 0x105   : > { %1799 = vmatprep.mubr.bf16.mxu1 %v2767_v4  ;;  %1960 = vmatprep.mubr.bf16.mxu0 %v2769_v5  ;;  %v265_v4 = vld [vmem:[%s3913_s29 + $0x18] sm:$0xff] }
 0x106   : > { %v269_v5 = vld [vmem:[%s3913_s29 + $0x38] sm:$0xff]  ;;  %2314 = vmatprep.subr.bf16.mxu0 %v3540_v3 }
 0x107   : > { %2315 = vmatpush1.bf16.msra.mxu0 %v3538_v2  ;;  %v2707_v8 = vcombine.high %v265_v4, %v269_v5  ;;  %v305_v2 = vld [vmem:[%s3913_s29 + $0x158] sm:$0xff] }
 0x108   : > { %2316 = vmatprep.subr.bf16.mxu0 %v3543_v14  ;;  %v309_v3 = vld [vmem:[%s3913_s29 + $0x178] sm:$0xff]  ;;  %v3549_v14 = vld [vmem:[#allocation7 + $0x24] ss:$8 sps:$4 sm:$0xff]  }
 0x10c   : > { %1800 = vmatmul.mubr.bf16.gmra.mxu1 %v2766_v10  ;;  %1961 = vmatmul.mubr.bf16.gmra.mxu0 %v2768_v11  ;;  %v277_v10 = vld [vmem:[%s3913_s29 + $0x78] sm:$0xff]  ;;  %v2706_v11 = vcombine.low %v265_v4, %v269_v5 }
 0x10d   : > { %1807 = vmatprep.mubr.bf16.mxu1 %v2775_v12  ;;  %1968 = vmatprep.mubr.bf16.mxu0 %v2777_v13  ;;  %v2715_v12 = vcombine.high %v273_v9, %v277_v10  ;;  %v3541_v13 = vld [vmem:[#allocation7 + $0x40] ss:$8 sps:$4 sm:$0xff]   ;;  %v2714_v25 = vcombine.low %v273_v9, %v277_v10  ;;  %v2747_v9 = vcombine.high %v305_v2, %v309_v3 }
 0x10e   : > { %2317 = vmatpush1.bf16.msra.mxu0 %v3541_v13  ;;  %v3547_v13 = vld [vmem:[#allocation7 + $0x20] ss:$8 sps:$4 sm:$0xff]  }
 0x114   : > { %1808 = vmatmul.mubr.bf16.gmra.mxu1 %v2774_v18  ;;  %1969 = vmatmul.mubr.bf16.gmra.mxu0 %v2776_v19  ;;  %v281_v19 = vld [vmem:[%s3913_s29 + $0x98] sm:$0xff] }
 0x115   : > { %1815 = vmatprep.mubr.bf16.mxu1 %v2783_v20  ;;  %1976 = vmatprep.mubr.bf16.mxu0 %v2785_v21  ;;  %v285_v20 = vld [vmem:[%s3913_s29 + $0xb8] sm:$0xff] }
 0x116   : > { %v2722_v40 = vcombine.low %v281_v19, %v285_v20 }
 0x11c   : > { %1816 = vmatmul.mubr.bf16.gmra.mxu1 %v2782_v26  ;;  %1977 = vmatmul.mubr.bf16.gmra.mxu0 %v2784_v27  ;;  %v2723_v26 = vcombine.high %v281_v19, %v285_v20  ;;  %v313_v19 = vld [vmem:[%s3913_s29 + $0x198] sm:$0xff] }
 0x11d   : > { %1823 = vmatprep.mubr.bf16.mxu1 %v2791_v28  ;;  %1984 = vmatprep.mubr.bf16.mxu0 %v2793_v29  ;;  %v317_v20 = vld [vmem:[%s3913_s29 + $0x1b8] sm:$0xff] }
 0x124   : > { %1824 = vmatmul.mubr.bf16.gmra.mxu1 %v2790_v36  ;;  %1985 = vmatmul.mubr.bf16.gmra.mxu0 %v2792_v37 }
 0x125   : > { %1831 = vmatprep.mubr.bf16.mxu1 %v2799_v38  ;;  %1992 = vmatprep.mubr.bf16.mxu0 %v2801_v39 }
 0x12c   : > { %1832 = vmatmul.mubr.bf16.gmra.mxu1 %v2798_v44  ;;  %1993 = vmatmul.mubr.bf16.gmra.mxu0 %v2800_v45  ;;  %v3544_v45 = vld [vmem:[#allocation7 + $0x30] ss:$8 sps:$4 sm:$0xff]  }
 0x12d   : > { %1839 = vmatprep.mubr.bf16.mxu1 %v2807_v46  ;;  %2000 = vmatprep.mubr.bf16.mxu0 %v2809_v47  ;;  %v3546_v46 = vld [vmem:[#allocation7 + $0x34] ss:$8 sps:$4 sm:$0xff]  }
 0x12e   : > { %2318 = vmatprep.subr.bf16.mxu0 %v3546_v46 }
 0x12f   : > { %2319 = vmatpush1.bf16.msra.mxu0 %v3544_v45  ;;  %v325_v45 = vld [vmem:[%s3913_s29 + $0x1f8] sm:$0xff] }
 0x130   : > { %2320 = vmatprep.subr.bf16.mxu0 %v3549_v14 }
 0x133   : > { %2321 = vmatpush1.bf16.msra.mxu0 %v3547_v13 }
 0x134   : > { %1840 = vmatmul.mubr.bf16.gmra.mxu1 %v2806_v54  ;;  %2001 = vmatmul.mubr.bf16.gmra.mxu0 %v2808_v55 }
 0x135   : > { %1847 = vmatprep.mubr.bf16.mxu1 %v2815_v56  ;;  %2008 = vmatprep.mubr.bf16.mxu0 %v2817_v57  ;;  %v2730_v57 = vcombine.low %v289_v34, %v293_v35 }
 0x13c   : > { %1848 = vmatmul.mubr.bf16.gmra.mxu1 %v2814_v62  ;;  %2009 = vmatmul.mubr.bf16.gmra.mxu0 %v2816_v63 }
 0x13d   : > { %1855 = vmatprep.mubr.bf16.mxu1 %v2823_v0  ;;  %2016 = vmatprep.mubr.bf16.mxu0 %v2825_v1 }
 0x144   : > { %1856 = vmatmul.mubr.bf16.gmra.mxu1 %v2822_v6  ;;  %2017 = vmatmul.mubr.bf16.gmra.mxu0 %v2824_v7 }
 0x145   : > { %2057 = vmatprep.mubr.bf16.mxu1 %v2707_v8  ;;  %v2738_v8 = vcombine.low %v297_v51, %v301_v52 }
 0x14c   : > { %v2982_v15 = vpop.f32.mrf.mxu1  ;;  %2058 = vmatmul.mubr.bf16.vlgmr.msra.gmra.mxu1 %v2706_v11  ;;  %v2934_v16 = vpop.f32.mrf.mxu0 }
 0x14d   : > { %2065 = vmatprep.mubr.bf16.mxu1 %v2715_v12 }
 0x14e   : > { %v2983_v17 = vpop.f32.mrf.mxu1  ;;  %v2935_v18 = vpop.f32.mrf.mxu0 }
 0x14f   : > { %v4029_v21 = vadd.f32 %v2983_v17, %v2982_v15  ;;  %v4031_v22 = vadd.f32 %v2935_v18, %v2934_v16 }
 0x150   : > { %v2985_v23 = vpop.f32.mrf.mxu1  ;;  %v4033_v24 = vpop.f32.mrf.mxu0 }
 0x152   : > { %v2986_v27 = vpop.f32.mrf.mxu1  ;;  %v4035_v28 = vpop.f32.mrf.mxu0 }
 0x153   : > { %v4037_v29 = vadd.f32 %v2986_v27, %v2985_v23 }
 0x154   : > { %v2988_v30 = vpop.f32.mrf.mxu1  ;;  %2066 = vmatmul.mubr.bf16.gmra.mxu1 %v2714_v25  ;;  %v2940_v31 = vpop.f32.mrf.mxu0 }
 0x155   : > { %2073 = vmatprep.mubr.bf16.mxu1 %v2723_v26 }
 0x156   : > { %v2989_v32 = vpop.f32.mrf.mxu1  ;;  %v2941_v33 = vpop.f32.mrf.mxu0 }
 0x157   : > { %v4041_v36 = vadd.f32 %v2989_v32, %v2988_v30  ;;  %v4043_v37 = vadd.f32 %v2941_v33, %v2940_v31  ;;  %v2746_v30 = vcombine.low %v305_v2, %v309_v3  ;;  %v2755_v31 = vcombine.high %v313_v19, %v317_v20  ;;  %v329_v2 = vld [vmem:[%s3913_s29 + $0x218] sm:$0xff] }
 0x158   : > { %v2991_v38 = vpop.f32.mrf.mxu1  ;;  %v4045_v39 = vpop.f32.mrf.mxu0  ;;  %v333_v3 = vld [vmem:[%s3913_s29 + $0x238] sm:$0xff] }
 0x159   : > { %v2771_v14 = vcombine.high %v329_v2, %v333_v3 }
 0x15a   : > { %v2992_v42 = vpop.f32.mrf.mxu1  ;;  %v4047_v43 = vpop.f32.mrf.mxu0 }
 0x15b   : > { %v4049_v44 = vadd.f32 %v2992_v42, %v2991_v38  ;;  %v321_v42 = vld [vmem:[%s3913_s29 + $0x1d8] sm:$0xff] }
 0x15c   : > { %v2994_v47 = vpop.f32.mrf.mxu1  ;;  %2074 = vmatmul.mubr.bf16.gmra.mxu1 %v2722_v40  ;;  %v2946_v48 = vpop.f32.mrf.mxu0  ;;  %v2763_v51 = vcombine.high %v321_v42, %v325_v45  ;;  %v2762_v13 = vcombine.low %v321_v42, %v325_v45 }
 0x15d   : > { %2081 = vmatprep.mubr.bf16.mxu1 %v2731_v41 }
 0x15e   : > { %v2995_v49 = vpop.f32.mrf.mxu1  ;;  %v2947_v50 = vpop.f32.mrf.mxu0 }
 0x15f   : > { %v4053_v53 = vadd.f32 %v2995_v49, %v2994_v47  ;;  %v4055_v54 = vadd.f32 %v2947_v50, %v2946_v48  ;;  %v2754_v50 = vcombine.low %v313_v19, %v317_v20 }
 0x160   : > { %v2997_v55 = vpop.f32.mrf.mxu1  ;;  %v4057_v56 = vpop.f32.mrf.mxu0 }
 0x162   : > { %v2998_v59 = vpop.f32.mrf.mxu1  ;;  %v4059_v60 = vpop.f32.mrf.mxu0 }
 0x163   : > { %v4061_v61 = vadd.f32 %v2998_v59, %v2997_v55  ;;  %v3552_v59 = vld [vmem:[#allocation7 + $0x14] ss:$8 sps:$4 sm:$0xff]  }
 0x164   : > { %v3000_v62 = vpop.f32.mrf.mxu1  ;;  %2082 = vmatmul.mubr.bf16.gmra.mxu1 %v2730_v57  ;;  %v2952_v63 = vpop.f32.mrf.mxu0  ;;  %2322 = vmatprep.subr.bf16.mxu0 %v3552_v59 }
 0x165   : > { %2089 = vmatprep.mubr.bf16.mxu1 %v2739_v58  ;;  %v3550_v58 = vld [vmem:[#allocation7 + $0x10] ss:$8 sps:$4 sm:$0xff]  }
 0x166   : > { %v3001_v0 = vpop.f32.mrf.mxu1  ;;  %v2953_v1 = vpop.f32.mrf.mxu0  ;;  %2323 = vmatpush1.bf16.msra.mxu0 %v3550_v58 }
 0x167   : > { %v4065_v4 = vadd.f32 %v3001_v0, %v3000_v62  ;;  %v4067_v5 = vadd.f32 %v2953_v1, %v2952_v63 }
 0x168   : > { %v3003_v6 = vpop.f32.mrf.mxu1  ;;  %v4069_v7 = vpop.f32.mrf.mxu0 }
 0x16a   : > { %v3004_v10 = vpop.f32.mrf.mxu1  ;;  %v4071_v11 = vpop.f32.mrf.mxu0 }
 0x16b   : > { %v4073_v12 = vadd.f32 %v3004_v10, %v3003_v6 }
 0x16c   : > { %v3006_v15 = vpop.f32.mrf.mxu1  ;;  %2090 = vmatmul.mubr.bf16.gmra.mxu1 %v2738_v8  ;;  %v2958_v16 = vpop.f32.mrf.mxu0 }
 0x16d   : > { %2097 = vmatprep.mubr.bf16.mxu1 %v2747_v9 }
 0x16e   : > { %v3007_v17 = vpop.f32.mrf.mxu1  ;;  %v2959_v18 = vpop.f32.mrf.mxu0 }
 0x16f   : > { %v4077_v23 = vadd.f32 %v3007_v17, %v3006_v15  ;;  %v4079_v25 = vadd.f32 %v2959_v18, %v2958_v16 }
 0x170   : > { %v3009_v26 = vpop.f32.mrf.mxu1  ;;  %v4081_v27 = vpop.f32.mrf.mxu0 }
 0x172   : > { %v3010_v32 = vpop.f32.mrf.mxu1  ;;  %v4083_v33 = vpop.f32.mrf.mxu0 }
 0x173   : > { %v4085_v34 = vadd.f32 %v3010_v32, %v3009_v26 }
 0x174   : > { %v3012_v35 = vpop.f32.mrf.mxu1  ;;  %2098 = vmatmul.mubr.bf16.gmra.mxu1 %v2746_v30  ;;  %v2964_v38 = vpop.f32.mrf.mxu0  ;;  %v337_v30 = vld [vmem:[%s3913_s29 + $0x258] sm:$0xff] }
 0x175   : > { %2105 = vmatprep.mubr.bf16.mxu1 %v2755_v31  ;;  %v341_v31 = vld [vmem:[%s3913_s29 + $0x278] sm:$0xff] }
 0x176   : > { %v3013_v40 = vpop.f32.mrf.mxu1  ;;  %v2965_v41 = vpop.f32.mrf.mxu0  ;;  %v2779_v42 = vcombine.high %v337_v30, %v341_v31 }
 0x177   : > { %v4089_v46 = vadd.f32 %v3013_v40, %v3012_v35  ;;  %v4091_v47 = vadd.f32 %v2965_v41, %v2964_v38  ;;  %v2770_v41 = vcombine.low %v329_v2, %v333_v3 }
 0x178   : > { %v3015_v48 = vpop.f32.mrf.mxu1  ;;  %v4093_v49 = vpop.f32.mrf.mxu0 }
 0x17a   : > { %v3016_v52 = vpop.f32.mrf.mxu1  ;;  %v4095_v55 = vpop.f32.mrf.mxu0 }
 0x17b   : > { %v4097_v57 = vadd.f32 %v3016_v52, %v3015_v48  ;;  %v3555_v52 = vld [vmem:[#allocation7 + $0x4] ss:$8 sps:$4 sm:$0xff]  }
 0x17c   : > { %v3018_v62 = vpop.f32.mrf.mxu1  ;;  %2106 = vmatmul.mubr.bf16.gmra.mxu1 %v2754_v50  ;;  %v2970_v63 = vpop.f32.mrf.mxu0  ;;  %2324 = vmatprep.subr.bf16.mxu0 %v3555_v52  ;;  %v2945_v52 = vadd.f32 %v4047_v43, %v4045_v39 }
 0x17d   : > { %2113 = vmatprep.mubr.bf16.mxu1 %v2763_v51  ;;  %v3553_v51 = vld [vmem:[#allocation7] ss:$8 sps:$4 sm:$0xff]  }
 0x17e   : > { %v3019_v0 = vpop.f32.mrf.mxu1  ;;  %v2971_v1 = vpop.f32.mrf.mxu0  ;;  %2325 = vmatpush1.bf16.msra.mxu0 %v3553_v51  ;;  %v357_v51 = vld [vmem:[%s3913_s29 + $0x2f8] sm:$0xff] }
 0x17f   : > { %v4101_v6 = vadd.f32 %v3019_v0, %v3018_v62  ;;  %v4103_v8 = vadd.f32 %v2971_v1, %v2970_v63  ;;  %v345_v0 = vld [vmem:[%s3913_s29 + $0x298] sm:$0xff] }
 0x180   : > { %v3021_v9 = vpop.f32.mrf.mxu1  ;;  %v4105_v10 = vpop.f32.mrf.mxu0  ;;  %v349_v1 = vld [vmem:[%s3913_s29 + $0x2b8] sm:$0xff] }
 0x182   : > { %v3022_v15 = vpop.f32.mrf.mxu1  ;;  %v4107_v16 = vpop.f32.mrf.mxu0 }
 0x183   : > { %v4109_v17 = vadd.f32 %v3022_v15, %v3021_v9 }
 0x184   : > { %v3024_v18 = vpop.f32.mrf.mxu1  ;;  %2114 = vmatmul.mubr.bf16.gmra.mxu1 %v2762_v13  ;;  %v2976_v19 = vpop.f32.mrf.mxu0  ;;  %v2778_v13 = vcombine.low %v337_v30, %v341_v31 }
 0x185   : > { %2121 = vmatprep.mubr.bf16.mxu1 %v2771_v14  ;;  %v2939_v14 = vadd.f32 %v4035_v28, %v4033_v24  ;;  %v4636_v28 = vmov 0  }
 0x186   : > { %v3025_v20 = vpop.f32.mrf.mxu1  ;;  %v2977_v26 = vpop.f32.mrf.mxu0  ;;  %2342 = vmatprep.mubr.bf16.mxu0 %v4636_v28  ;;  %v381_v28 = vld [vmem:[%s3913_s29 + $0x3b8] sm:$0xff] }
 0x187   : > { %v4113_v32 = vadd.f32 %v3025_v20, %v3024_v18  ;;  %v4115_v35 = vadd.f32 %v2977_v26, %v2976_v19  ;;  %v2787_v18 = vcombine.high %v345_v0, %v349_v1 }
 0x188   : > { %v3027_v38 = vpop.f32.mrf.mxu1  ;;  %v4117_v40 = vpop.f32.mrf.mxu0 }
 0x18a   : > { %v3028_v45 = vpop.f32.mrf.mxu1  ;;  %v4119_v48 = vpop.f32.mrf.mxu0 }
 0x18b   : > { %v4121_v50 = vadd.f32 %v3028_v45, %v3027_v38  ;;  %v353_v45 = vld [vmem:[%s3913_s29 + $0x2d8] sm:$0xff] }
 0x18c   : > { %v3046_v58 = vpop.f32.mrf.mxu1  ;;  %2122 = vmatmul.mubr.bf16.gmra.mxu1 %v2770_v41  ;;  %v4123_v59 = vpop.f32.mrf.mxu0  ;;  %v2794_v43 = vcombine.low %v353_v45, %v357_v51 }
 0x18d   : > { %2129 = vmatprep.mubr.bf16.mxu1 %v2779_v42 }
 0x18e   : > { %v3047_v62 = vpop.f32.mrf.mxu1  ;;  %v4125_v63 = vpop.f32.mrf.mxu0 }
 0x18f   : > { %v3048_v2 = vadd.f32 %v3047_v62, %v3046_v58  ;;  %v2795_v62 = vcombine.high %v353_v45, %v357_v51  ;;  %v2957_v51 = vadd.f32 %v4071_v11, %v4069_v7 }
 0x190   : > { %v3049_v3 = vpop.f32.mrf.mxu1  ;;  %v4129_v9 = vpop.f32.mrf.mxu0 }
 0x191   : > { %v4134_v15 = vadd.f32 %v3048_v2, %v4031_v22  ;;  %v2786_v22 = vcombine.low %v345_v0, %v349_v1  ;;  %v361_v1 = vld [vmem:[%s3913_s29 + $0x318] sm:$0xff] }
 0x192   : > { %v3050_v19 = vpop.f32.mrf.mxu1  ;;  %v4136_v38 = vpop.f32.mrf.mxu0 }
 0x193   : > { %v3051_v20 = vadd.f32 %v3050_v19, %v3049_v3  ;;  %v365_v19 = vld [vmem:[%s3913_s29 + $0x338] sm:$0xff] }
 0x194   : > { %v3052_v26 = vpop.f32.mrf.mxu1  ;;  %2130 = vmatmul.mubr.bf16.gmra.mxu1 %v2778_v13  ;;  %v4142_v31 = vpop.f32.mrf.mxu0 }
 0x195   : > { %v4138_v41 = vadd.f32 %v3051_v20, %v2939_v14  ;;  %2137 = vmatprep.mubr.bf16.mxu1 %v2787_v18 }
 0x196   : > { %v3053_v42 = vpop.f32.mrf.mxu1  ;;  %v4150_v13 = vpop.f32.mrf.mxu0 }
 0x197   : > { %v3054_v30 = vadd.f32 %v3053_v42, %v3052_v26  ;;  %v2951_v26 = vadd.f32 %v4059_v60, %v4057_v56  ;;  %v2802_v60 = vcombine.low %v361_v1, %v365_v19 }
 0x198   : > { %v3055_v24 = vpop.f32.mrf.mxu1  ;;  %v4156_v39 = vpop.f32.mrf.mxu0 }
 0x199   : > { %v4148_v58 = vadd.f32 %v3054_v30, %v4043_v37  ;;  %v2803_v30 = vcombine.high %v361_v1, %v365_v19  ;;  %v2963_v19 = vadd.f32 %v4083_v33, %v4081_v27 }
 0x19a   : > { %v3056_v2 = vpop.f32.mrf.mxu1 }
 0x19b   : > { %v3057_v3 = vadd.f32 %v3056_v2, %v3055_v24 }
 0x19c   : > { %v3058_v14 = vpop.f32.mrf.mxu1  ;;  %2138 = vmatmul.mubr.bf16.gmra.mxu1 %v2786_v22 }
 0x19d   : > { %v4152_v18 = vadd.f32 %v3057_v3, %v2945_v52  ;;  %2145 = vmatprep.mubr.bf16.mxu1 %v2795_v62  ;;  %v4163_v52 = vpop.f32.mrf.mxu0 }
 0x19e   : > { %v3059_v0 = vpop.f32.mrf.mxu1 }
 0x19f   : > { %v3060_v20 = vadd.f32 %v3059_v0, %v3058_v14  ;;  %v369_v14 = vld [vmem:[%s3913_s29 + $0x358] sm:$0xff]  ;;  %v4169_v56 = vpop.f32.mrf.mxu0 }
 0x1a0   : > { %v3061_v37 = vpop.f32.mrf.mxu1  ;;  %v373_v0 = vld [vmem:[%s3913_s29 + $0x378] sm:$0xff] }
 0x1a1   : > { %v4161_v42 = vadd.f32 %v3060_v20, %v4055_v54  ;;  %v2810_v11 = vcombine.low %v369_v14, %v373_v0 }
 0x1a2   : > { %v3062_v24 = vpop.f32.mrf.mxu1 }
 0x1a3   : > { %v3063_v22 = vadd.f32 %v3062_v24, %v3061_v37  ;;  %v2811_v37 = vcombine.high %v369_v14, %v373_v0 }
 0x1a4   : > { %v3064_v62 = vpop.f32.mrf.mxu1  ;;  %2146 = vmatmul.mubr.bf16.gmra.mxu1 %v2794_v43 }
 0x1a5   : > { %v4165_v2 = vadd.f32 %v3063_v22, %v2951_v26  ;;  %2153 = vmatprep.mubr.bf16.mxu1 %v2803_v30  ;;  %v4176_v30 = vpop.f32.mrf.mxu0 }
 0x1a6   : > { %v3065_v3 = vpop.f32.mrf.mxu1 }
 0x1a7   : > { %v3066_v45 = vadd.f32 %v3065_v3, %v3064_v62  ;;  %v377_v3 = vld [vmem:[%s3913_s29 + $0x398] sm:$0xff]  ;;  %v4182_v7 = vpop.f32.mrf.mxu0 }
 0x1a8   : > { %v3067_v54 = vpop.f32.mrf.mxu1  ;;  %v2818_v33 = vcombine.low %v377_v3, %v381_v28 }
 0x1a9   : > { %v4174_v20 = vadd.f32 %v3066_v45, %v4067_v5 }
 0x1aa   : > { %v3068_v43 = vpop.f32.mrf.mxu1 }
 0x1ab   : > { %v3069_v26 = vadd.f32 %v3068_v43, %v3067_v54  ;;  %v2819_v54 = vcombine.high %v377_v3, %v381_v28 }
 0x1ac   : > { %v3070_v24 = vpop.f32.mrf.mxu1  ;;  %2154 = vmatmul.mubr.bf16.gmra.mxu1 %v2802_v60 }
 0x1ad   : > { %v4178_v22 = vadd.f32 %v3069_v26, %v2957_v51  ;;  %2161 = vmatprep.mubr.bf16.mxu1 %v2811_v37  ;;  %v4189_v37 = vpop.f32.mrf.mxu0 }
 0x1ae   : > { %v3071_v62 = vpop.f32.mrf.mxu1 }
 0x1af   : > { %4651 = vst [vmem:[#allocation15_spill] sm:$0xff] %v4178_v22  ;;  %v3072_v1 = vadd.f32 %v3071_v62, %v3070_v24  ;;  %v385_v62 = vld [vmem:[%s3913_s29 + $0x3d8] sm:$0xff]  ;;  %v4195_v0 = vpop.f32.mrf.mxu0 }
 0x1b0   : > { %v3073_v5 = vpop.f32.mrf.mxu1  ;;  %v389_v22 = vld [vmem:[%s3913_s29 + $0x3f8] sm:$0xff] }
 0x1b1   : > { %v4187_v45 = vadd.f32 %v3072_v1, %v4079_v25  ;;  %v2969_v25 = vadd.f32 %v4095_v55, %v4093_v49  ;;  %v2826_v3 = vcombine.low %v385_v62, %v389_v22 }
 0x1b2   : > { %v3074_v60 = vpop.f32.mrf.mxu1 }
 0x1b3   : > { %v3075_v51 = vadd.f32 %v3074_v60, %v3073_v5  ;;  %v2827_v5 = vcombine.high %v385_v62, %v389_v22  ;;  %v2981_v22 = vadd.f32 %v4119_v48, %v4117_v40 }
 0x1b4   : > { %v3076_v43 = vpop.f32.mrf.mxu1  ;;  %2162 = vmatmul.mubr.bf16.gmra.mxu1 %v2810_v11 }
 0x1b5   : > { %v4191_v26 = vadd.f32 %v3075_v51, %v2963_v19  ;;  %2169 = vmatprep.mubr.bf16.mxu1 %v2819_v54  ;;  %v4202_v19 = vpop.f32.mrf.mxu0 }
 0x1b6   : > { %v3077_v24 = vpop.f32.mrf.mxu1 }
 0x1b7   : > { %4652 = vst [vmem:[#allocation16_spill] sm:$0xff] %v4191_v26  ;;  %v3078_v14 = vadd.f32 %v3077_v24, %v3076_v43  ;;  %v4206_v26 = vpop.f32.mrf.mxu0 }
 0x1b8   : > { %v3079_v27 = vpop.f32.mrf.mxu1 }
 0x1b9   : > { %v4200_v1 = vadd.f32 %v3078_v14, %v4091_v47  ;;  %v2975_v47 = vadd.f32 %v4107_v16, %v4105_v10 }
 0x1ba   : > { %v3080_v60 = vpop.f32.mrf.mxu1 }
 0x1bb   : > { %v3081_v11 = vadd.f32 %v3080_v60, %v3079_v27  ;;  %v4213_v27 = vpop.f32.mrf.mxu0 }
 0x1bc   : > { %v3082_v54 = vpop.f32.mrf.mxu1  ;;  %2170 = vmatmul.mubr.bf16.gmra.mxu1 %v2818_v33 }
 0x1bd   : > { %v4204_v51 = vadd.f32 %v3081_v11, %v2969_v25  ;;  %2177 = vmatprep.mubr.bf16.mxu1 %v2827_v5  ;;  %v4217_v11 = vpop.f32.mrf.mxu0 }
 0x1be   : > { %v3083_v43 = vpop.f32.mrf.mxu1 }
 0x1bf   : > { %v3084_v24 = vadd.f32 %v3083_v43, %v3082_v54  ;;  %v4224_v62 = vpop.f32.mrf.mxu0 }
 0x1c0   : > { %v3085_v28 = vpop.f32.mrf.mxu1 }
 0x1c1   : > { %v4211_v49 = vadd.f32 %v3084_v24, %v4103_v8 }
 0x1c2   : > { %v3086_v55 = vpop.f32.mrf.mxu1 }
 0x1c3   : > { %v3087_v14 = vadd.f32 %v3086_v55, %v3085_v28 }
 0x1c4   : > { %v3088_v33 = vpop.f32.mrf.mxu1  ;;  %2178 = vmatmul.mubr.bf16.gmra.mxu1 %v2826_v3 }
 0x1c5   : > { %v4215_v25 = vadd.f32 %v3087_v14, %v2975_v47  ;;  %v4228_v47 = vpop.f32.mrf.mxu0 }
 0x1c6   : > { %v3089_v5 = vpop.f32.mrf.mxu1 }
 0x1c7   : > { %v3090_v60 = vadd.f32 %v3089_v5, %v3088_v33  ;;  %v4233_v48 = vpop.f32.mrf.mxu0 }
 0x1c8   : > { %v3091_v54 = vpop.f32.mrf.mxu1 }
 0x1c9   : > { %v4222_v10 = vadd.f32 %v3090_v60, %v4115_v35 }
 0x1ca   : > { %v3092_v8 = vpop.f32.mrf.mxu1 }
 0x1cb   : > { %v3093_v16 = vadd.f32 %v3092_v8, %v3091_v54 }
 0x1cc   : > { %v3094_v43 = vpop.f32.mrf.mxu1 }
 0x1cd   : > { %v4226_v24 = vadd.f32 %v3093_v16, %v2981_v22  ;;  %v4238_v22 = vpop.f32.mrf.mxu0 }
 0x1ce   : > { %v3095_v28 = vpop.f32.mrf.mxu1 }
 0x1cf   : > { %v3096_v3 = vadd.f32 %v3095_v28, %v3094_v43 }
 0x1d0   : > { %v3097_v55 = vpop.f32.mrf.mxu1 }
 0x1d1   : > { %v4231_v14 = vadd.f32 %v3096_v3, %v4029_v21  ;;  %v4243_v21 = vpop.f32.mrf.mxu0 }
 0x1d2   : > { %v3098_v33 = vpop.f32.mrf.mxu1 }
 0x1d3   : > { %4653 = vst [vmem:[#allocation17_spill] sm:$0xff] %v4231_v14  ;;  %v3099_v40 = vadd.f32 %v3098_v33, %v3097_v55 }
 0x1d4   : > { %v3100_v35 = vpop.f32.mrf.mxu1 }
 0x1d5   : > { %v4236_v5 = vadd.f32 %v3099_v40, %v4037_v29  ;;  %v4248_v29 = vpop.f32.mrf.mxu0 }
 0x1d6   : > { %v3101_v60 = vpop.f32.mrf.mxu1 }
 0x1d7   : > { %4654 = vst [vmem:[#allocation18_spill] sm:$0xff] %v4236_v5  ;;  %v3102_v54 = vadd.f32 %v3101_v60, %v3100_v35 }
 0x1d8   : > { %v3103_v8 = vpop.f32.mrf.mxu1 }
 0x1d9   : > { %v4241_v16 = vadd.f32 %v3102_v54, %v4041_v36  ;;  %v4253_v36 = vpop.f32.mrf.mxu0 }
 0x1da   : > { %v3104_v43 = vpop.f32.mrf.mxu1 }
 0x1db   : > { %4655 = vst [vmem:[#allocation19_spill] sm:$0xff] %v4241_v16  ;;  %v3105_v28 = vadd.f32 %v3104_v43, %v3103_v8 }
 0x1dc   : > { %v3106_v3 = vpop.f32.mrf.mxu1 }
 0x1dd   : > { %v4246_v55 = vadd.f32 %v3105_v28, %v4049_v44  ;;  %v4258_v44 = vpop.f32.mrf.mxu0 }
 0x1de   : > { %v3107_v33 = vpop.f32.mrf.mxu1 }
 0x1df   : > { %4656 = vst [vmem:[#allocation20_spill] sm:$0xff] %v4246_v55  ;;  %v3108_v14 = vadd.f32 %v3107_v33, %v3106_v3 }
 0x1e0   : > { %v3109_v40 = vpop.f32.mrf.mxu1 }
 0x1e1   : > { %v4251_v35 = vadd.f32 %v3108_v14, %v4053_v53  ;;  %v4263_v53 = vpop.f32.mrf.mxu0 }
 0x1e2   : > { %v3110_v60 = vpop.f32.mrf.mxu1 }
 0x1e3   : > { %4657 = vst [vmem:[#allocation21_spill] sm:$0xff] %v4251_v35  ;;  %v3111_v5 = vadd.f32 %v3110_v60, %v3109_v40 }
 0x1e4   : > { %v3112_v54 = vpop.f32.mrf.mxu1 }
 0x1e5   : > { %v4256_v8 = vadd.f32 %v3111_v5, %v4061_v61  ;;  %v4268_v61 = vpop.f32.mrf.mxu0 }
 0x1e6   : > { %v3113_v43 = vpop.f32.mrf.mxu1 }
 0x1e7   : > { %4658 = vst [vmem:[#allocation22_spill] sm:$0xff] %v4256_v8  ;;  %v3114_v16 = vadd.f32 %v3113_v43, %v3112_v54 }
 0x1e8   : > { %v3115_v28 = vpop.f32.mrf.mxu1 }
 0x1e9   : > { %v4261_v3 = vadd.f32 %v3114_v16, %v4065_v4  ;;  %v4273_v4 = vpop.f32.mrf.mxu0 }
 0x1ea   : > { %v3116_v33 = vpop.f32.mrf.mxu1 }
 0x1eb   : > { %4659 = vst [vmem:[#allocation23_spill] sm:$0xff] %v4261_v3  ;;  %v3117_v55 = vadd.f32 %v3116_v33, %v3115_v28 }
 0x1ec   : > { %v3118_v14 = vpop.f32.mrf.mxu1 }
 0x1ed   : > { %v4266_v40 = vadd.f32 %v3117_v55, %v4073_v12  ;;  %v4278_v12 = vpop.f32.mrf.mxu0 }
 0x1ee   : > { %v3119_v60 = vpop.f32.mrf.mxu1 }
 0x1ef   : > { %4660 = vst [vmem:[#allocation24_spill] sm:$0xff] %v4266_v40  ;;  %v3120_v35 = vadd.f32 %v3119_v60, %v3118_v14 }
 0x1f0   : > { %v3121_v5 = vpop.f32.mrf.mxu1 }
 0x1f1   : > { %v4271_v54 = vadd.f32 %v3120_v35, %v4077_v23  ;;  %v4283_v23 = vpop.f32.mrf.mxu0 }
 0x1f2   : > { %v3122_v43 = vpop.f32.mrf.mxu1 }
 0x1f3   : > { %4661 = vst [vmem:[#allocation25_spill] sm:$0xff] %v4271_v54  ;;  %v3123_v8 = vadd.f32 %v3122_v43, %v3121_v5 }
 0x1f4   : > { %v3124_v16 = vpop.f32.mrf.mxu1 }
 0x1f5   : > { %v4276_v28 = vadd.f32 %v3123_v8, %v4085_v34  ;;  %v4288_v34 = vpop.f32.mrf.mxu0 }
 0x1f6   : > { %v3125_v33 = vpop.f32.mrf.mxu1 }
 0x1f7   : > { %4662 = vst [vmem:[#allocation26_spill] sm:$0xff] %v4276_v28  ;;  %v3126_v3 = vadd.f32 %v3125_v33, %v3124_v16 }
 0x1f8   : > { %v3127_v55 = vpop.f32.mrf.mxu1 }
 0x1f9   : > { %v4281_v14 = vadd.f32 %v3126_v3, %v4089_v46  ;;  %v4293_v46 = vpop.f32.mrf.mxu0 }
 0x1fa   : > { %v3128_v60 = vpop.f32.mrf.mxu1 }
 0x1fb   : > { %4663 = vst [vmem:[#allocation27_spill] sm:$0xff] %v4281_v14  ;;  %v3129_v40 = vadd.f32 %v3128_v60, %v3127_v55 }
 0x1fc   : > { %v3130_v35 = vpop.f32.mrf.mxu1 }
 0x1fd   : > { %v4286_v5 = vadd.f32 %v3129_v40, %v4097_v57  ;;  %v4298_v57 = vpop.f32.mrf.mxu0 }
 0x1fe   : > { %v3131_v43 = vpop.f32.mrf.mxu1 }
 0x1ff   : > { %4664 = vst [vmem:[#allocation28_spill] sm:$0xff] %v4286_v5  ;;  %v3132_v54 = vadd.f32 %v3131_v43, %v3130_v35 }
 0x200   : > { %v3133_v8 = vpop.f32.mrf.mxu1 }
 0x201   : > { %v4291_v16 = vadd.f32 %v3132_v54, %v4101_v6  ;;  %v4303_v6 = vpop.f32.mrf.mxu0 }
 0x202   : > { %v3134_v33 = vpop.f32.mrf.mxu1 }
 0x203   : > { %4665 = vst [vmem:[#allocation29_spill] sm:$0xff] %v4291_v16  ;;  %v3135_v28 = vadd.f32 %v3134_v33, %v3133_v8 }
 0x204   : > { %v3136_v3 = vpop.f32.mrf.mxu1 }
 0x205   : > { %v4296_v55 = vadd.f32 %v3135_v28, %v4109_v17  ;;  %v3160_v17 = vadd.f32 %v4125_v63, %v4123_v59  ;;  %v3163_v28 = vadd.f32 %v4136_v38, %v4129_v9  ;;  %v3166_v59 = vadd.f32 %v4150_v13, %v4142_v31 }
 0x206   : > { %v3137_v60 = vpop.f32.mrf.mxu1  ;;  %v3169_v63 = vadd.f32 %v4163_v52, %v4156_v39  ;;  %v3172_v52 = vadd.f32 %v4176_v30, %v4169_v56 }
 0x207   : > { %4666 = vst [vmem:[#allocation30_spill] sm:$0xff] %v4296_v55  ;;  %v3138_v14 = vadd.f32 %v3137_v60, %v3136_v3  ;;  %v4312_v3 = vpop.f32.mrf.mxu0 }
 0x208   : > { %v3139_v40 = vpop.f32.mrf.mxu1 }
 0x209   : > { %v4301_v35 = vadd.f32 %v3138_v14, %v4113_v32  ;;  %v4316_v55 = vpop.f32.mrf.mxu0 }
 0x20a   : > { %v3140_v43 = vpop.f32.mrf.mxu1 }
 0x20b   : > { %4667 = vst [vmem:[#allocation31_spill] sm:$0xff] %v4301_v35  ;;  %v3141_v5 = vadd.f32 %v3140_v43, %v3139_v40  ;;  %v1899_v40 = vadd.f32 %v3160_v17, %v4134_v15  ;;  %v1902_v43 = vadd.f32 %v3163_v28, %v4138_v41  ;;  %v4322_v38 = vpop.f32.mrf.mxu0  ;;  %v1907_v17 = vadd.f32 %v3166_v59, %v4148_v58 }
 0x20c   : > { %v3270_v54 = vpop.f32.mrf.mxu1 }
 0x20d   : > { %v4306_v8 = vadd.f32 %v3141_v5, %v4121_v50 }
 0x20e   : > { %v3271_v33 = vpop.f32.mrf.mxu1 }
 0x20f   : > { %4668 = vst [vmem:[#allocation32_spill] sm:$0xff] %v4306_v8  ;;  %v3272_v32 = vadd.f32 %v3271_v33, %v3270_v54  ;;  %v4669_v33 = vmov 0  }
 0x210   : > { %v3273_v60 = vpop.f32.mrf.mxu1 }
 0x211   : > { %v2060_v5 = vadd.f32 %v3272_v32, %v1899_v40 }
 0x212   : > { %v3274_v14 = vpop.f32.mrf.mxu1 }
 0x213   : > { %v3275_v35 = vadd.f32 %v3274_v14, %v3273_v60  ;;  %v4327_v60 = vpop.f32.mrf.mxu0 }
 0x214   : > { %v3276_v50 = vpop.f32.mrf.mxu1 }
 0x215   : > { %v2063_v8 = vadd.f32 %v3275_v35, %v1902_v43  ;;  %v1910_v35 = vadd.f32 %v3169_v63, %v4152_v18  ;;  %v4333_v14 = vpop.f32.mrf.mxu0  ;;  %v1915_v43 = vadd.f32 %v3172_v52, %v4161_v42 }
 0x216   : > { %v3277_v16 = vpop.f32.mrf.mxu1 }
 0x217   : > { %v2186_v9 = vpack.c.bf16 %v2063_v8, %v2060_v5  ;;  %v3278_v15 = vadd.f32 %v3277_v16, %v3276_v50  ;;  %v3175_v16 = vadd.f32 %v4189_v37, %v4182_v7  ;;  %v4338_v59 = vpop.f32.mrf.mxu0  ;;  %v3178_v37 = vadd.f32 %v4202_v19, %v4195_v0 }
 0x218   : > { %v3279_v54 = vpop.f32.mrf.mxu1 }
 0x219   : > { %2343 = vmatmul.mubr.bf16.vlgmr.msra.gmra.mxu0 %v2186_v9  ;;  %v2068_v13 = vadd.f32 %v3278_v15, %v1907_v17  ;;  %v1918_v50 = vadd.f32 %v3175_v16, %v4165_v2  ;;  %v3181_v9 = vadd.f32 %v4213_v27, %v4206_v26  ;;  %v4344_v15 = vpop.f32.mrf.mxu0  ;;  %v1923_v17 = vadd.f32 %v3178_v37, %v4174_v20 }
 0x21a   : > { %v3280_v41 = vpop.f32.mrf.mxu1  ;;  %2352 = vmatprep.mubr.bf16.mxu0 %v4669_v33  ;;  %v3184_v27 = vadd.f32 %v4224_v62, %v4217_v11 }
 0x21b   : > { %v3281_v28 = vadd.f32 %v3280_v41, %v3279_v54 }
 0x21c   : > { %v3282_v31 = vpop.f32.mrf.mxu1 }
 0x21d   : > { %v2071_v32 = vadd.f32 %v3281_v28, %v1910_v35  ;;  %v4670_v35 = vld [vmem:[#allocation15_spill] sm:$0xff] }
 0x21e   : > { %v3283_v39 = vpop.f32.mrf.mxu1  ;;  %v1926_v28 = vadd.f32 %v3181_v9, %v4670_v35  ;;  %v3199_v35 = vadd.f32 %v4273_v4, %v4268_v61  ;;  %v3202_v4 = vadd.f32 %v4283_v23, %v4278_v12 }
 0x21f   : > { %v2187_v8 = vpack.c.bf16 %v2071_v32, %v2068_v13  ;;  %v3284_v58 = vadd.f32 %v3283_v39, %v3282_v31  ;;  %v4349_v13 = vpop.f32.mrf.mxu0  ;;  %v3187_v39 = vadd.f32 %v4233_v48, %v4228_v47  ;;  %v3190_v48 = vadd.f32 %v4243_v21, %v4238_v22 }
 0x220   : > { %v3285_v40 = vpop.f32.mrf.mxu1 }
 0x221   : > { %2353 = vmatmul.mubr.bf16.gmra.mxu0 %v2187_v8  ;;  %v2076_v30 = vadd.f32 %v3284_v58, %v1915_v43  ;;  %v4355_v16 = vpop.f32.mrf.mxu0  ;;  %v1931_v58 = vadd.f32 %v3184_v27, %v4187_v45 }
 0x222   : > { %v3286_v18 = vpop.f32.mrf.mxu1  ;;  %2362 = vmatprep.mubr.bf16.mxu0 %v4669_v33 }
 0x223   : > { %v3287_v5 = vadd.f32 %v3286_v18, %v3285_v40  ;;  %v4671_v18 = vld [vmem:[#allocation16_spill] sm:$0xff] }
 0x224   : > { %v3288_v56 = vpop.f32.mrf.mxu1  ;;  %v1934_v43 = vadd.f32 %v3187_v39, %v4671_v18 }
 0x225   : > { %v2079_v63 = vadd.f32 %v3287_v5, %v1918_v50  ;;  %v4360_v5 = vpop.f32.mrf.mxu0 }
 0x226   : > { %v3289_v7 = vpop.f32.mrf.mxu1 }
 0x227   : > { %v2188_v54 = vpack.c.bf16 %v2079_v63, %v2076_v30  ;;  %v3290_v42 = vadd.f32 %v3289_v7, %v3288_v56  ;;  %v3193_v30 = vadd.f32 %v4253_v36, %v4248_v29  ;;  %v4366_v7 = vpop.f32.mrf.mxu0  ;;  %v3196_v36 = vadd.f32 %v4263_v53, %v4258_v44 }
 0x228   : > { %v3291_v41 = vpop.f32.mrf.mxu1 }
 0x229   : > { %2363 = vmatmul.mubr.bf16.gmra.mxu0 %v2188_v54  ;;  %v2084_v19 = vadd.f32 %v3290_v42, %v1923_v17  ;;  %v1939_v54 = vadd.f32 %v3190_v48, %v4200_v1 }
 0x22a   : > { %v3292_v2 = vpop.f32.mrf.mxu1  ;;  %2372 = vmatprep.mubr.bf16.mxu0 %v4669_v33 }
 0x22b   : > { %v3293_v31 = vadd.f32 %v3292_v2, %v3291_v41  ;;  %v1942_v41 = vadd.f32 %v3193_v30, %v4204_v51  ;;  %v4371_v2 = vpop.f32.mrf.mxu0  ;;  %v4672_v30 = vld [vmem:[#allocation17_spill] sm:$0xff] }
 0x22c   : > { %v3294_v0 = vpop.f32.mrf.mxu1 }
 0x22d   : > { %v2087_v32 = vadd.f32 %v3293_v31, %v1926_v28  ;;  %v4377_v31 = vpop.f32.mrf.mxu0 }
 0x22e   : > { %v3295_v26 = vpop.f32.mrf.mxu1 }
 0x22f   : > { %v2189_v52 = vpack.c.bf16 %v2087_v32, %v2084_v19  ;;  %v3296_v20 = vadd.f32 %v3295_v26, %v3294_v0  ;;  %v1947_v19 = vadd.f32 %v3196_v36, %v4211_v49  ;;  %v1950_v32 = vadd.f32 %v3199_v35, %v4215_v25  ;;  %v4382_v27 = vpop.f32.mrf.mxu0  ;;  %v4674_v35 = vld [vmem:[#allocation19_spill] sm:$0xff] }
 0x230   : > { %v3297_v8 = vpop.f32.mrf.mxu1 }
 0x231   : > { %2373 = vmatmul.mubr.bf16.gmra.mxu0 %v2189_v52  ;;  %v2092_v62 = vadd.f32 %v3296_v20, %v1931_v58  ;;  %v3205_v52 = vadd.f32 %v4293_v46, %v4288_v34  ;;  %v4388_v20 = vpop.f32.mrf.mxu0  ;;  %v1955_v58 = vadd.f32 %v3202_v4, %v4222_v10  ;;  %v3208_v46 = vadd.f32 %v4303_v6, %v4298_v57 }
 0x232   : > { %v3298_v40 = vpop.f32.mrf.mxu1  ;;  %2382 = vmatprep.mubr.bf16.mxu0 %v4669_v33 }
 0x233   : > { %v3299_v50 = vadd.f32 %v3298_v40, %v3297_v8  ;;  %v1958_v18 = vadd.f32 %v3205_v52, %v4226_v24  ;;  %v4676_v52 = vld [vmem:[#allocation21_spill] sm:$0xff] }
 0x234   : > { %v3300_v11 = vpop.f32.mrf.mxu1 }
 0x235   : > { %v2095_v56 = vadd.f32 %v3299_v50, %v1934_v43  ;;  %v4393_v50 = vpop.f32.mrf.mxu0 }
 0x236   : > { %v3301_v47 = vpop.f32.mrf.mxu1 }
 0x237   : > { %v2190_v63 = vpack.c.bf16 %v2095_v56, %v2092_v62  ;;  %v3302_v45 = vadd.f32 %v3301_v47, %v3300_v11  ;;  %v3211_v62 = vadd.f32 %v4316_v55, %v4312_v3  ;;  %v4399_v47 = vpop.f32.mrf.mxu0  ;;  %v3214_v55 = vadd.f32 %v4327_v60, %v4322_v38 }
 0x238   : > { %v3303_v37 = vpop.f32.mrf.mxu1  ;;  %v3217_v3 = vadd.f32 %v4338_v59, %v4333_v14  ;;  %v3220_v14 = vadd.f32 %v4349_v13, %v4344_v15  ;;  %v3223_v59 = vadd.f32 %v4360_v5, %v4355_v16  ;;  %v3226_v16 = vadd.f32 %v4371_v2, %v4366_v7 }
 0x239   : > { %2383 = vmatmul.mubr.bf16.gmra.mxu0 %v2190_v63  ;;  %v2100_v21 = vadd.f32 %v3302_v45, %v1939_v54  ;;  %v1963_v63 = vadd.f32 %v3208_v46, %v4672_v30  ;;  %v3234_v54 = vpop.f32.mrf.mxu0  ;;  %v3229_v5 = vadd.f32 %v4382_v27, %v4377_v31  ;;  %v3232_v31 = vadd.f32 %v4393_v50, %v4388_v20 }
 0x23a   : > { %v3304_v9 = vpop.f32.mrf.mxu1  ;;  %2392 = vmatprep.mubr.bf16.mxu0 %v4669_v33  ;;  %v3235_v27 = vadd.f32 %v3234_v54, %v4399_v47 }
 0x23b   : > { %v3305_v42 = vadd.f32 %v3304_v9, %v3303_v37  ;;  %v4673_v37 = vld [vmem:[#allocation18_spill] sm:$0xff] }
 0x23c   : > { %v3306_v22 = vpop.f32.mrf.mxu1  ;;  %v1966_v45 = vadd.f32 %v3211_v62, %v4673_v37  ;;  %v4678_v62 = vld [vmem:[#allocation23_spill] sm:$0xff] }
 0x23d   : > { %v2103_v17 = vadd.f32 %v3305_v42, %v1942_v41 }
 0x23e   : > { %v3307_v29 = vpop.f32.mrf.mxu1 }
 0x23f   : > { %v2191_v28 = vpack.c.bf16 %v2103_v17, %v2100_v21  ;;  %v3308_v1 = vadd.f32 %v3307_v29, %v3306_v22  ;;  %v4408_v21 = vpop.f32.mrf.mxu0 }
 0x240   : > { %v3309_v0 = vpop.f32.mrf.mxu1 }
 0x241   : > { %2393 = vmatmul.mubr.bf16.gmra.mxu0 %v2191_v28  ;;  %v2108_v53 = vadd.f32 %v3308_v1, %v1947_v19  ;;  %v1971_v28 = vadd.f32 %v3214_v55, %v4674_v35  ;;  %v3237_v19 = vpop.f32.mrf.mxu0 }
 0x242   : > { %v3310_v51 = vpop.f32.mrf.mxu1  ;;  %2402 = vmatprep.mubr.bf16.mxu0 %v4669_v33  ;;  %v3238_v50 = vadd.f32 %v3237_v19, %v4408_v21 }
 0x243   : > { %v3311_v26 = vadd.f32 %v3310_v51, %v3309_v0  ;;  %v4675_v0 = vld [vmem:[#allocation20_spill] sm:$0xff] }
 0x244   : > { %v3312_v44 = vpop.f32.mrf.mxu1  ;;  %v1974_v1 = vadd.f32 %v3217_v3, %v4675_v0  ;;  %v4681_v3 = vld [vmem:[#allocation26_spill] sm:$0xff] }
 0x245   : > { %v2111_v39 = vadd.f32 %v3311_v26, %v1950_v32 }
 0x246   : > { %v3313_v61 = vpop.f32.mrf.mxu1 }
 0x247   : > { %v2192_v8 = vpack.c.bf16 %v2111_v39, %v2108_v53  ;;  %v3314_v49 = vadd.f32 %v3313_v61, %v3312_v44  ;;  %v3239_v53 = vpop.f32.mrf.mxu0 }
 0x248   : > { %v3315_v40 = vpop.f32.mrf.mxu1 }
 0x249   : > { %2403 = vmatmul.mubr.bf16.gmra.mxu0 %v2192_v8  ;;  %v2116_v23 = vadd.f32 %v3314_v49, %v1955_v58  ;;  %v1979_v8 = vadd.f32 %v3220_v14, %v4676_v52  ;;  %v3240_v58 = vpop.f32.mrf.mxu0 }
 0x24a   : > { %v3316_v25 = vpop.f32.mrf.mxu1  ;;  %2412 = vmatprep.mubr.bf16.mxu0 %v4669_v33  ;;  %v3241_v47 = vadd.f32 %v3240_v58, %v3239_v53  ;;  %v4684_v58 = vld [vmem:[#allocation29_spill] sm:$0xff] }
 0x24b   : > { %v3317_v43 = vadd.f32 %v3316_v25, %v3315_v40  ;;  %v4677_v40 = vld [vmem:[#allocation22_spill] sm:$0xff] }
 0x24c   : > { %v3318_v12 = vpop.f32.mrf.mxu1  ;;  %v1982_v49 = vadd.f32 %v3223_v59, %v4677_v40 }
 0x24d   : > { %v2119_v11 = vadd.f32 %v3317_v43, %v1958_v18 }
 0x24e   : > { %v3319_v34 = vpop.f32.mrf.mxu1 }
 0x24f   : > { %v2193_v56 = vpack.c.bf16 %v2119_v11, %v2116_v23  ;;  %v3320_v10 = vadd.f32 %v3319_v34, %v3318_v12  ;;  %v3242_v23 = vpop.f32.mrf.mxu0 }
 0x250   : > { %v3321_v48 = vpop.f32.mrf.mxu1 }
 0x251   : > { %2413 = vmatmul.mubr.bf16.gmra.mxu0 %v2193_v56  ;;  %v2124_v57 = vadd.f32 %v3320_v10, %v1963_v63  ;;  %v1987_v56 = vadd.f32 %v3226_v16, %v4678_v62  ;;  %v3243_v30 = vpop.f32.mrf.mxu0 }
 0x252   : > { %v3322_v24 = vpop.f32.mrf.mxu1  ;;  %2422 = vmatprep.mubr.bf16.mxu0 %v4669_v33  ;;  %v3244_v21 = vadd.f32 %v3243_v30, %v3242_v23 }
 0x253   : > { %v3323_v9 = vadd.f32 %v3322_v24, %v3321_v48  ;;  %v4679_v48 = vld [vmem:[#allocation24_spill] sm:$0xff] }
 0x254   : > { %v3324_v41 = vpop.f32.mrf.mxu1  ;;  %v1990_v10 = vadd.f32 %v3229_v5, %v4679_v48 }
 0x255   : > { %v2127_v6 = vadd.f32 %v3323_v9, %v1966_v45  ;;  %v3245_v9 = vpop.f32.mrf.mxu0 }
 0x256   : > { %v3325_v42 = vpop.f32.mrf.mxu1 }
 0x257   : > { %v2194_v22 = vpack.c.bf16 %v2127_v6, %v2124_v57  ;;  %v3326_v29 = vadd.f32 %v3325_v42, %v3324_v41  ;;  %v4680_v42 = vld [vmem:[#allocation25_spill] sm:$0xff] }
 0x258   : > { %v3327_v17 = vpop.f32.mrf.mxu1  ;;  %v1995_v55 = vadd.f32 %v3232_v31, %v4680_v42 }
 0x259   : > { %2423 = vmatmul.mubr.bf16.gmra.mxu0 %v2194_v22  ;;  %v2132_v38 = vadd.f32 %v3326_v29, %v1971_v28  ;;  %v1998_v22 = vadd.f32 %v3235_v27, %v4681_v3  ;;  %v3246_v29 = vpop.f32.mrf.mxu0 }
 0x25a   : > { %v3328_v36 = vpop.f32.mrf.mxu1  ;;  %2432 = vmatprep.mubr.bf16.mxu0 %v4669_v33  ;;  %v3247_v19 = vadd.f32 %v3246_v29, %v3245_v9 }
 0x25b   : > { %v3329_v51 = vadd.f32 %v3328_v36, %v3327_v17  ;;  %v3248_v0 = vpop.f32.mrf.mxu0 }
 0x25c   : > { %v3330_v32 = vpop.f32.mrf.mxu1 }
 0x25d   : > { %v2135_v60 = vadd.f32 %v3329_v51, %v1974_v1 }
 0x25e   : > { %v3331_v26 = vpop.f32.mrf.mxu1 }
 0x25f   : > { %v2195_v44 = vpack.c.bf16 %v2135_v60, %v2132_v38  ;;  %v3332_v61 = vadd.f32 %v3331_v26, %v3330_v32  ;;  %v4682_v38 = vld [vmem:[#allocation27_spill] sm:$0xff]  ;;  %v4683_v26 = vld [vmem:[#allocation28_spill] sm:$0xff] }
 0x260   : > { %v3333_v39 = vpop.f32.mrf.mxu1  ;;  %v2003_v60 = vadd.f32 %v3238_v50, %v4682_v38  ;;  %v2006_v14 = vadd.f32 %v3241_v47, %v4683_v26 }
 0x261   : > { %2433 = vmatmul.mubr.bf16.gmra.mxu0 %v2195_v44  ;;  %v2140_v43 = vadd.f32 %v3332_v61, %v1979_v8  ;;  %v3249_v44 = vpop.f32.mrf.mxu0 }
 0x262   : > { %v3334_v4 = vpop.f32.mrf.mxu1  ;;  %2442 = vmatprep.mubr.bf16.mxu0 %v4669_v33  ;;  %v3250_v23 = vadd.f32 %v3249_v44, %v3248_v0 }
 0x263   : > { %v3335_v25 = vadd.f32 %v3334_v4, %v3333_v39  ;;  %v3251_v8 = vpop.f32.mrf.mxu0 }
 0x264   : > { %v3336_v18 = vpop.f32.mrf.mxu1 }
 0x265   : > { %v2143_v15 = vadd.f32 %v3335_v25, %v1982_v49  ;;  %v3252_v16 = vpop.f32.mrf.mxu0 }
 0x266   : > { %v3337_v13 = vpop.f32.mrf.mxu1 }
 0x267   : > { %v2196_v12 = vpack.c.bf16 %v2143_v15, %v2140_v43  ;;  %v3338_v34 = vadd.f32 %v3337_v13, %v3336_v18  ;;  %v2011_v18 = vadd.f32 %v3244_v21, %v4684_v58  ;;  %v4685_v43 = vld [vmem:[#allocation30_spill] sm:$0xff] }
 0x268   : > { %v3339_v11 = vpop.f32.mrf.mxu1  ;;  %v2014_v15 = vadd.f32 %v3247_v19, %v4685_v43 }
 0x269   : > { %2443 = vmatmul.mubr.bf16.gmra.mxu0 %v2196_v12  ;;  %v2148_v37 = vadd.f32 %v3338_v34, %v1987_v56 }
 0x26a   : > { %v3340_v46 = vpop.f32.mrf.mxu1  ;;  %2452 = vmatprep.mubr.bf16.mxu0 %v4669_v33 }
 0x26b   : > { %v3341_v24 = vadd.f32 %v3340_v46, %v3339_v11  ;;  %v3253_v46 = vadd.f32 %v3252_v16, %v3251_v8 }
 0x26c   : > { %v3342_v63 = vpop.f32.mrf.mxu1 }
 0x26d   : > { %v2151_v7 = vadd.f32 %v3341_v24, %v1990_v10  ;;  %v4686_v24 = vld [vmem:[#allocation31_spill] sm:$0xff] }
 0x26e   : > { %v3343_v2 = vpop.f32.mrf.mxu1  ;;  %v2019_v30 = vadd.f32 %v3250_v23, %v4686_v24 }
 0x26f   : > { %v2197_v45 = vpack.c.bf16 %v2151_v7, %v2148_v37  ;;  %v3344_v57 = vadd.f32 %v3343_v2, %v3342_v63  ;;  %v4687_v63 = vld [vmem:[#allocation32_spill] sm:$0xff] }
 0x270   : > { %v3345_v41 = vpop.f32.mrf.mxu1  ;;  %v2022_v37 = vadd.f32 %v3253_v46, %v4687_v63 }
 0x271   : > { %2453 = vmatmul.mubr.bf16.gmra.mxu0 %v2197_v45  ;;  %v2156_v35 = vadd.f32 %v3344_v57, %v1995_v55  ;;  %v2220_v45 = vlaneseq  ;;  %v2218_v57 = vld [vmem:[#allocation8] sm:$0x3] }
 0x272   : > { %v3346_v6 = vpop.f32.mrf.mxu1  ;;  %2462 = vmatprep.mubr.bf16.mxu0 %v4669_v33 }
 0x273   : > { %v3347_v17 = vadd.f32 %v3346_v6, %v3345_v41  ;;  %v2221_v9 = vshrl.u32 %v2220_v45, 7 }
 0x274   : > { %v3348_v36 = vpop.f32.mrf.mxu1 }
 0x275   : > { %v2159_v28 = vadd.f32 %v3347_v17, %v1998_v22  ;;  %v2222_v41 = vsub.s32 0, %v2221_v9  ;;  %v2226_v6 = vsub.s32 1, %v2221_v9 }
 0x276   : > { %v3349_v20 = vpop.f32.mrf.mxu1 }
 0x277   : > { %v2198_v54 = vpack.c.bf16 %v2159_v28, %v2156_v35  ;;  %v3350_v51 = vadd.f32 %v3349_v20, %v3348_v36  ;;  %v4444_v42 = vrot.slane %v2218_v57, %v2222_v41  ;;  %v4446_v55 = vrot.slane %v2218_v57, %v2226_v6 }
 0x278   : > { %v3351_v1 = vpop.f32.mrf.mxu1 }
 0x279   : > { %2463 = vmatmul.mubr.bf16.gmra.mxu0 %v2198_v54  ;;  %v2164_v61 = vadd.f32 %v3350_v51, %v2003_v60 }
 0x27a   : > { %v3352_v32 = vpop.f32.mrf.mxu1  ;;  %2472 = vmatprep.mubr.bf16.mxu0 %v4669_v33 }
 0x27b   : > { %v3353_v59 = vadd.f32 %v3352_v32, %v3351_v1 }
 0x27c   : > { %v3354_v39 = vpop.f32.mrf.mxu1 }
 0x27d   : > { %v2167_v4 = vadd.f32 %v3353_v59, %v2006_v14 }
 0x27e   : > { %v3355_v52 = vpop.f32.mrf.mxu1 }
 0x27f   : > { %v2199_v53 = vpack.c.bf16 %v2167_v4, %v2164_v61  ;;  %v3356_v49 = vadd.f32 %v3355_v52, %v3354_v39 }
 0x280   : > { %v3357_v40 = vpop.f32.mrf.mxu1 }
 0x281   : > { %2473 = vmatmul.mubr.bf16.gmra.mxu0 %v2199_v53  ;;  %v2172_v12 = vadd.f32 %v3356_v49, %v2011_v18 }
 0x282   : > { %v3358_v25 = vpop.f32.mrf.mxu1  ;;  %2482 = vmatprep.mubr.bf16.mxu0 %v4669_v33 }
 0x283   : > { %v3359_v13 = vadd.f32 %v3358_v25, %v3357_v40 }
 0x284   : > { %v3360_v5 = vpop.f32.mrf.mxu1 }
 0x285   : > { %v2175_v11 = vadd.f32 %v3359_v13, %v2014_v15 }
 0x286   : > { %v3361_v34 = vpop.f32.mrf.mxu1 }
 0x287   : > { %v2200_v62 = vpack.c.bf16 %v2175_v11, %v2172_v12  ;;  %v3362_v48 = vadd.f32 %v3361_v34, %v3360_v5 }
 0x288   : > { %v3363_v56 = vpop.f32.mrf.mxu1 }
 0x289   : > { %2483 = vmatmul.mubr.bf16.gmra.mxu0 %v2200_v62  ;;  %v2180_v2 = vadd.f32 %v3362_v48, %v2019_v30 }
 0x28a   : > { %v3364_v10 = vpop.f32.mrf.mxu1  ;;  %2492 = vmatprep.mubr.bf16.mxu0 %v4669_v33 }
 0x28b   : > { %v3365_v7 = vadd.f32 %v3364_v10, %v3363_v56 }
 0x28d   : > { %v2183_v31 = vadd.f32 %v3365_v7, %v2022_v37 }
 0x28f   : > { %v2201_v27 = vpack.c.bf16 %v2183_v31, %v2180_v2 }
 0x291   : > { %2493 = vmatmul.mubr.bf16.gmra.mxu0 %v2201_v27 }
 0x2d9   : > { %v2344_v33 = vpop.f32.mrf.mxu0 }
 0x2da   : > { %v2345_v3 = vadd.f32 %v2344_v33, %v4444_v42 }
 0x2db   : > { %v2346_v22 = vpop.f32.mrf.mxu0 }
 0x2dc   : > { %2503 = vst [vmem:[%s4449_s23] sm:$0xff] %v2345_v3  ;;  %v2347_v17 = vadd.f32 %v2346_v22, %v4446_v55 }
 0x2dd   : > { %v2348_v29 = vpop.f32.mrf.mxu0 }
 0x2de   : > { %2504 = vst [vmem:[%s4449_s23 + $0x8] sm:$0xff] %v2347_v17  ;;  %v2349_v36 = vadd.f32 %v2348_v29, %v4444_v42 }
 0x2df   : > { %v2350_v35 = vpop.f32.mrf.mxu0 }
 0x2e0   : > { %2505 = vst [vmem:[%s4449_s23 + $0x10] sm:$0xff] %v2349_v36  ;;  %v2351_v28 = vadd.f32 %v2350_v35, %v4446_v55 }
 0x2e1   : > { %v2354_v20 = vpop.f32.mrf.mxu0 }
 0x2e2   : > { %2506 = vst [vmem:[%s4449_s23 + $0x18] sm:$0xff] %v2351_v28  ;;  %v2355_v50 = vadd.f32 %v2354_v20, %v4444_v42 }
 0x2e3   : > { %v2356_v47 = vpop.f32.mrf.mxu0 }
 0x2e4   : > { %2507 = vst [vmem:[%s4449_s23 + $0x20] sm:$0xff] %v2355_v50  ;;  %v2357_v54 = vadd.f32 %v2356_v47, %v4446_v55 }
 0x2e5   : > { %v2358_v0 = vpop.f32.mrf.mxu0 }
 0x2e6   : > { %2508 = vst [vmem:[%s4449_s23 + $0x28] sm:$0xff] %v2357_v54  ;;  %v2359_v1 = vadd.f32 %v2358_v0, %v4444_v42 }
 0x2e7   : > { %v2360_v51 = vpop.f32.mrf.mxu0 }
 0x2e8   : > { %2509 = vst [vmem:[%s4449_s23 + $0x30] sm:$0xff] %v2359_v1  ;;  %v2361_v32 = vadd.f32 %v2360_v51, %v4446_v55 }
 0x2e9   : > { %v2364_v38 = vpop.f32.mrf.mxu0 }
 0x2ea   : > { %2510 = vst [vmem:[%s4449_s23 + $0x38] sm:$0xff] %v2361_v32  ;;  %v2365_v60 = vadd.f32 %v2364_v38, %v4444_v42 }
 0x2eb   : > { %v2366_v26 = vpop.f32.mrf.mxu0 }
 0x2ec   : > { %2511 = vst [vmem:[%s4449_s23 + $0x40] sm:$0xff] %v2365_v60  ;;  %v2367_v14 = vadd.f32 %v2366_v26, %v4446_v55 }
 0x2ed   : > { %v2368_v59 = vpop.f32.mrf.mxu0 }
 0x2ee   : > { %2512 = vst [vmem:[%s4449_s23 + $0x48] sm:$0xff] %v2367_v14  ;;  %v2369_v44 = vadd.f32 %v2368_v59, %v4444_v42 }
 0x2ef   : > { %v2370_v39 = vpop.f32.mrf.mxu0 }
 0x2f0   : > { %2513 = vst [vmem:[%s4449_s23 + $0x50] sm:$0xff] %v2369_v44  ;;  %v2371_v61 = vadd.f32 %v2370_v39, %v4446_v55 }
 0x2f1   : > { %v2374_v4 = vpop.f32.mrf.mxu0 }
 0x2f2   : > { %2514 = vst [vmem:[%s4449_s23 + $0x58] sm:$0xff] %v2371_v61  ;;  %v2375_v52 = vadd.f32 %v2374_v4, %v4444_v42 }
 0x2f3   : > { %v2376_v21 = vpop.f32.mrf.mxu0 }
 0x2f4   : > { %2515 = vst [vmem:[%s4449_s23 + $0x60] sm:$0xff] %v2375_v52  ;;  %v2377_v19 = vadd.f32 %v2376_v21, %v4446_v55 }
 0x2f5   : > { %v2378_v53 = vpop.f32.mrf.mxu0 }
 0x2f6   : > { %2516 = vst [vmem:[%s4449_s23 + $0x68] sm:$0xff] %v2377_v19  ;;  %v2379_v8 = vadd.f32 %v2378_v53, %v4444_v42 }
 0x2f7   : > { %v2380_v40 = vpop.f32.mrf.mxu0 }
 0x2f8   : > { %2517 = vst [vmem:[%s4449_s23 + $0x70] sm:$0xff] %v2379_v8  ;;  %v2381_v49 = vadd.f32 %v2380_v40, %v4446_v55 }
 0x2f9   : > { %v2384_v25 = vpop.f32.mrf.mxu0 }
 0x2fa   : > { %2518 = vst [vmem:[%s4449_s23 + $0x78] sm:$0xff] %v2381_v49  ;;  %v2385_v58 = vadd.f32 %v2384_v25, %v4444_v42 }
 0x2fb   : > { %v2386_v18 = vpop.f32.mrf.mxu0 }
 0x2fc   : > { %2519 = vst [vmem:[%s4449_s23 + $0x80] sm:$0xff] %v2385_v58  ;;  %v2387_v43 = vadd.f32 %v2386_v18, %v4446_v55 }
 0x2fd   : > { %v2388_v15 = vpop.f32.mrf.mxu0 }
 0x2fe   : > { %2520 = vst [vmem:[%s4449_s23 + $0x88] sm:$0xff] %v2387_v43  ;;  %v2389_v13 = vadd.f32 %v2388_v15, %v4444_v42 }
 0x2ff   : > { %v2390_v16 = vpop.f32.mrf.mxu0 }
 0x300   : > { %2521 = vst [vmem:[%s4449_s23 + $0x90] sm:$0xff] %v2389_v13  ;;  %v2391_v5 = vadd.f32 %v2390_v16, %v4446_v55 }
 0x301   : > { %v2394_v12 = vpop.f32.mrf.mxu0 }
 0x302   : > { %2522 = vst [vmem:[%s4449_s23 + $0x98] sm:$0xff] %v2391_v5  ;;  %v2395_v11 = vadd.f32 %v2394_v12, %v4444_v42 }
 0x303   : > { %v2396_v34 = vpop.f32.mrf.mxu0 }
 0x304   : > { %2523 = vst [vmem:[%s4449_s23 + $0xa0] sm:$0xff] %v2395_v11  ;;  %v2397_v23 = vadd.f32 %v2396_v34, %v4446_v55 }
 0x305   : > { %v2398_v46 = vpop.f32.mrf.mxu0 }
 0x306   : > { %2524 = vst [vmem:[%s4449_s23 + $0xa8] sm:$0xff] %v2397_v23  ;;  %v2399_v62 = vadd.f32 %v2398_v46, %v4444_v42 }
 0x307   : > { %v2400_v56 = vpop.f32.mrf.mxu0 }
 0x308   : > { %2525 = vst [vmem:[%s4449_s23 + $0xb0] sm:$0xff] %v2399_v62  ;;  %v2401_v48 = vadd.f32 %v2400_v56, %v4446_v55 }
 0x309   : > { %v2404_v10 = vpop.f32.mrf.mxu0 }
 0x30a   : > { %2526 = vst [vmem:[%s4449_s23 + $0xb8] sm:$0xff] %v2401_v48  ;;  %v2405_v24 = vadd.f32 %v2404_v10, %v4444_v42 }
 0x30b   : > { %v2406_v30 = vpop.f32.mrf.mxu0 }
 0x30c   : > { %2527 = vst [vmem:[%s4449_s23 + $0xc0] sm:$0xff] %v2405_v24  ;;  %v2407_v63 = vadd.f32 %v2406_v30, %v4446_v55 }
 0x30d   : > { %v2408_v37 = vpop.f32.mrf.mxu0 }
 0x30e   : > { %2528 = vst [vmem:[%s4449_s23 + $0xc8] sm:$0xff] %v2407_v63  ;;  %v2409_v7 = vadd.f32 %v2408_v37, %v4444_v42 }
 0x30f   : > { %v2410_v2 = vpop.f32.mrf.mxu0 }
 0x310   : > { %2529 = vst [vmem:[%s4449_s23 + $0xd0] sm:$0xff] %v2409_v7  ;;  %v2411_v31 = vadd.f32 %v2410_v2, %v4446_v55 }
 0x311   : > { %v2414_v27 = vpop.f32.mrf.mxu0 }
 0x312   : > { %2530 = vst [vmem:[%s4449_s23 + $0xd8] sm:$0xff] %v2411_v31  ;;  %v2415_v45 = vadd.f32 %v2414_v27, %v4444_v42 }
 0x313   : > { %v2416_v9 = vpop.f32.mrf.mxu0 }
 0x314   : > { %2531 = vst [vmem:[%s4449_s23 + $0xe0] sm:$0xff] %v2415_v45  ;;  %v2417_v41 = vadd.f32 %v2416_v9, %v4446_v55 }
 0x315   : > { %v2418_v57 = vpop.f32.mrf.mxu0 }
 0x316   : > { %2532 = vst [vmem:[%s4449_s23 + $0xe8] sm:$0xff] %v2417_v41  ;;  %v2419_v6 = vadd.f32 %v2418_v57, %v4444_v42 }
 0x317   : > { %v2420_v33 = vpop.f32.mrf.mxu0 }
 0x318   : > { %2533 = vst [vmem:[%s4449_s23 + $0xf0] sm:$0xff] %v2419_v6  ;;  %v2421_v3 = vadd.f32 %v2420_v33, %v4446_v55 }
 0x319   : > { %v2424_v22 = vpop.f32.mrf.mxu0 }
 0x31a   : > { %2534 = vst [vmem:[%s4449_s23 + $0xf8] sm:$0xff] %v2421_v3  ;;  %v2425_v17 = vadd.f32 %v2424_v22, %v4444_v42 }
 0x31b   : > { %v2426_v29 = vpop.f32.mrf.mxu0 }
 0x31c   : > { %2535 = vst [vmem:[%s4449_s23 + $0x100] sm:$0xff] %v2425_v17  ;;  %v2427_v36 = vadd.f32 %v2426_v29, %v4446_v55 }
 0x31d   : > { %v2428_v35 = vpop.f32.mrf.mxu0 }
 0x31e   : > { %2536 = vst [vmem:[%s4449_s23 + $0x108] sm:$0xff] %v2427_v36  ;;  %v2429_v28 = vadd.f32 %v2428_v35, %v4444_v42 }
 0x31f   : > { %v2430_v20 = vpop.f32.mrf.mxu0 }
 0x320   : > { %2537 = vst [vmem:[%s4449_s23 + $0x110] sm:$0xff] %v2429_v28  ;;  %v2431_v50 = vadd.f32 %v2430_v20, %v4446_v55 }
 0x321   : > { %v2434_v47 = vpop.f32.mrf.mxu0 }
 0x322   : > { %2538 = vst [vmem:[%s4449_s23 + $0x118] sm:$0xff] %v2431_v50  ;;  %v2435_v54 = vadd.f32 %v2434_v47, %v4444_v42 }
 0x323   : > { %v2436_v0 = vpop.f32.mrf.mxu0 }
 0x324   : > { %2539 = vst [vmem:[%s4449_s23 + $0x120] sm:$0xff] %v2435_v54  ;;  %v2437_v1 = vadd.f32 %v2436_v0, %v4446_v55 }
 0x325   : > { %v2438_v51 = vpop.f32.mrf.mxu0 }
 0x326   : > { %2540 = vst [vmem:[%s4449_s23 + $0x128] sm:$0xff] %v2437_v1  ;;  %v2439_v32 = vadd.f32 %v2438_v51, %v4444_v42 }
 0x327   : > { %v2440_v38 = vpop.f32.mrf.mxu0 }
 0x328   : > { %2541 = vst [vmem:[%s4449_s23 + $0x130] sm:$0xff] %v2439_v32  ;;  %v2441_v60 = vadd.f32 %v2440_v38, %v4446_v55 }
 0x329   : > { %v2444_v26 = vpop.f32.mrf.mxu0 }
 0x32a   : > { %2542 = vst [vmem:[%s4449_s23 + $0x138] sm:$0xff] %v2441_v60  ;;  %v2445_v14 = vadd.f32 %v2444_v26, %v4444_v42 }
 0x32b   : > { %v2446_v59 = vpop.f32.mrf.mxu0 }
 0x32c   : > { %2543 = vst [vmem:[%s4449_s23 + $0x140] sm:$0xff] %v2445_v14  ;;  %v2447_v44 = vadd.f32 %v2446_v59, %v4446_v55 }
 0x32d   : > { %v2448_v39 = vpop.f32.mrf.mxu0 }
 0x32e   : > { %2544 = vst [vmem:[%s4449_s23 + $0x148] sm:$0xff] %v2447_v44  ;;  %v2449_v61 = vadd.f32 %v2448_v39, %v4444_v42 }
 0x32f   : > { %v2450_v4 = vpop.f32.mrf.mxu0 }
 0x330   : > { %2545 = vst [vmem:[%s4449_s23 + $0x150] sm:$0xff] %v2449_v61  ;;  %v2451_v52 = vadd.f32 %v2450_v4, %v4446_v55 }
 0x331   : > { %v2454_v21 = vpop.f32.mrf.mxu0 }
 0x332   : > { %2546 = vst [vmem:[%s4449_s23 + $0x158] sm:$0xff] %v2451_v52  ;;  %v2455_v19 = vadd.f32 %v2454_v21, %v4444_v42 }
 0x333   : > { %v2456_v53 = vpop.f32.mrf.mxu0 }
 0x334   : > { %2547 = vst [vmem:[%s4449_s23 + $0x160] sm:$0xff] %v2455_v19  ;;  %v2457_v8 = vadd.f32 %v2456_v53, %v4446_v55 }
 0x335   : > { %v2458_v40 = vpop.f32.mrf.mxu0 }
 0x336   : > { %2548 = vst [vmem:[%s4449_s23 + $0x168] sm:$0xff] %v2457_v8  ;;  %v2459_v49 = vadd.f32 %v2458_v40, %v4444_v42 }
 0x337   : > { %v2460_v25 = vpop.f32.mrf.mxu0 }
 0x338   : > { %2549 = vst [vmem:[%s4449_s23 + $0x170] sm:$0xff] %v2459_v49  ;;  %v2461_v58 = vadd.f32 %v2460_v25, %v4446_v55 }
 0x339   : > { %v2464_v18 = vpop.f32.mrf.mxu0 }
 0x33a   : > { %2550 = vst [vmem:[%s4449_s23 + $0x178] sm:$0xff] %v2461_v58  ;;  %v2465_v43 = vadd.f32 %v2464_v18, %v4444_v42 }
 0x33b   : > { %v2466_v15 = vpop.f32.mrf.mxu0 }
 0x33c   : > { %2551 = vst [vmem:[%s4449_s23 + $0x180] sm:$0xff] %v2465_v43  ;;  %v2467_v13 = vadd.f32 %v2466_v15, %v4446_v55 }
 0x33d   : > { %v2468_v16 = vpop.f32.mrf.mxu0 }
 0x33e   : > { %2552 = vst [vmem:[%s4449_s23 + $0x188] sm:$0xff] %v2467_v13  ;;  %v2469_v5 = vadd.f32 %v2468_v16, %v4444_v42 }
 0x33f   : > { %v2470_v12 = vpop.f32.mrf.mxu0 }
 0x340   : > { %2553 = vst [vmem:[%s4449_s23 + $0x190] sm:$0xff] %v2469_v5  ;;  %v2471_v11 = vadd.f32 %v2470_v12, %v4446_v55 }
 0x341   : > { %v2474_v34 = vpop.f32.mrf.mxu0 }
 0x342   : > { %2554 = vst [vmem:[%s4449_s23 + $0x198] sm:$0xff] %v2471_v11  ;;  %v2475_v23 = vadd.f32 %v2474_v34, %v4444_v42 }
 0x343   : > { %v2476_v46 = vpop.f32.mrf.mxu0 }
 0x344   : > { %2555 = vst [vmem:[%s4449_s23 + $0x1a0] sm:$0xff] %v2475_v23  ;;  %v2477_v62 = vadd.f32 %v2476_v46, %v4446_v55 }
 0x345   : > { %v2478_v56 = vpop.f32.mrf.mxu0 }
 0x346   : > { %2556 = vst [vmem:[%s4449_s23 + $0x1a8] sm:$0xff] %v2477_v62  ;;  %v2479_v48 = vadd.f32 %v2478_v56, %v4444_v42 }
 0x347   : > { %v2480_v10 = vpop.f32.mrf.mxu0 }
 0x348   : > { %2557 = vst [vmem:[%s4449_s23 + $0x1b0] sm:$0xff] %v2479_v48  ;;  %v2481_v24 = vadd.f32 %v2480_v10, %v4446_v55 }
 0x349   : > { %v2484_v30 = vpop.f32.mrf.mxu0 }
 0x34a   : > { %2558 = vst [vmem:[%s4449_s23 + $0x1b8] sm:$0xff] %v2481_v24  ;;  %v2485_v63 = vadd.f32 %v2484_v30, %v4444_v42 }
 0x34b   : > { %v2486_v37 = vpop.f32.mrf.mxu0 }
 0x34c   : > { %2559 = vst [vmem:[%s4449_s23 + $0x1c0] sm:$0xff] %v2485_v63  ;;  %v2487_v7 = vadd.f32 %v2486_v37, %v4446_v55 }
 0x34d   : > { %v2488_v2 = vpop.f32.mrf.mxu0 }
 0x34e   : > { %2560 = vst [vmem:[%s4449_s23 + $0x1c8] sm:$0xff] %v2487_v7  ;;  %v2489_v31 = vadd.f32 %v2488_v2, %v4444_v42 }
 0x34f   : > { %v2490_v27 = vpop.f32.mrf.mxu0 }
 0x350   : > { %2561 = vst [vmem:[%s4449_s23 + $0x1d0] sm:$0xff] %v2489_v31  ;;  %v2491_v45 = vadd.f32 %v2490_v27, %v4446_v55 }
 0x351   : > { %v2494_v9 = vpop.f32.mrf.mxu0 }
 0x352   : > { %2562 = vst [vmem:[%s4449_s23 + $0x1d8] sm:$0xff] %v2491_v45  ;;  %v2495_v41 = vadd.f32 %v2494_v9, %v4444_v42 }
 0x353   : > { %v2496_v57 = vpop.f32.mrf.mxu0 }
 0x354   : > { %2563 = vst [vmem:[%s4449_s23 + $0x1e0] sm:$0xff] %v2495_v41  ;;  %v2497_v6 = vadd.f32 %v2496_v57, %v4446_v55 }
 0x355   : > { %v2498_v33 = vpop.f32.mrf.mxu0 }
 0x356   : > { %2564 = vst [vmem:[%s4449_s23 + $0x1e8] sm:$0xff] %v2497_v6  ;;  %v2499_v3 = vadd.f32 %v2498_v33, %v4444_v42 }
 0x357   : > { %v2500_v22 = vpop.f32.mrf.mxu0 }
 0x358   : > { %2565 = vst [vmem:[%s4449_s23 + $0x1f0] sm:$0xff] %v2499_v3  ;;  %v2501_v17 = vadd.f32 %v2500_v22, %v4446_v55 }
 0x35a   : > { %2566 = vst [vmem:[%s4449_s23 + $0x1f8] sm:$0xff] %v2501_v17 }
 0x35b   : > { %3675 = shalt.err (!%p3672_p9)
}
 0x35c   : > { %s3676_s11 = scalar_lea.hbm %s4580_s6, 8192  ;;  %s3680_s28 = scalar_lea.hbm %s4631_s4, 32768 }
 0x35d   : > { %p3677_p7 = scmp.ne.s32.totalorder %s4580_s6, %s3676_s11  ;;  %p3681_p6 = scmp.lt.s32.totalorder %s4580_s6, %s4631_s4 }
 0x35e   : > { %p3682_p10 = scmp.lt.s32.totalorder %s3680_s28, %s3676_s11 }
 0x35f   : > { %p3678_p4 = pnand %p3677_p7, %p4688_p13 }
 0x360   : > { %p3683_p12 = por %p3682_p10, %p3681_p6 }
 0x361   : > { %p3679_p8 = pneg %p3678_p4 }
 0x363   : > { %p3684_p11 = pnand %p3683_p12, %p3679_p8 }
 0x365   : > { %3687 = shalt.err (!%p3684_p11)
}
 0x366   : > { %s3748_s23 = smov 256   ;;  %s3749_s10 = smov 16  }
 0x367   : > { %3396 = dma.vmem_to_hbm [thread:$0]  (%p4688_p13), %s4582_s12, 8192, %s4580_s6, %s2568_s19, %s3748_s23, %s3748_s23, %s3749_s10  }
 0x368 PF: > { %p3423_p3 = scmp.ge.s32.totalorder %s3734_s18, 2  ;;  %s2597_s13 = sand.u32 1, %s3722_s15  }
 0x369   : > { %p4689_p0 = scmp.ne.s32.totalorder %s4639_s22, 0  ;;  %s2598_s14 = scalar_lea.sflag [#allocation4], %s2597_s13 }
 0x36b   : > { %p3413_p1 = pnand %p3423_p3, %p4689_p0 }
 0x36d   : > { %p3414_p2 = pneg %p3413_p1 }
 0x36f   : > { %3717 = dma.done.wait (%p3414_p2), %s2598_s14, 8192  }
 0x370   : > { %3719 = vsyncadd (%p3414_p2), %s2598_s14, 4294959104  ;;  %p19_p5 = scmp.ge.s32.totalorder %s3846_s20, 6   ;;  %s4690_s15 = smov %s3726_s16 }
 0x371   : > { %s4691_s16 = smov %s3730_s17  ;;  %s4692_s17 = smov %s3864_s26 }
 0x372   : > { %s4693_s18 = smov %s3846_s20  ;;  %21 = sbr.rel (!%p19_p5) target bundleno = 7 (0x7), region = 93 }
 0x377   :  { %2603 = vsyncpa [#allocation3], 1 }
 0x378   :  { %2605 = vsyncpa [#allocation3 + $0x1], 1 }
 0x379   :  { %2606 = vsyncpa [#allocation6], 1 }
 0x37a   :  { %2607 = vsyncpa [#allocation9], 1 }
 0x37b   :  { %2608 = vsyncpa [#allocation4], 1 }
 0x37c   :  { %2610 = vsyncpa [#allocation4 + $0x1], 1 }

</bundles_post_ra>
